<compile_context>
chip_gen: v5e
topology: v5e:2x2
jax: 0.10.0
libtpu: 0.0.40
codegen_flags: <defaults>
</compile_context>

<pallas_src>
import jax
import jax.numpy as jnp
from jax.experimental import pallas as pl
from jax.experimental.pallas import tpu as pltpu


def _make_fused_lstm_kernel(num_layers, T, B_pad, H, O, mxu_dtype):
    """Build the fused kernel.

    Ref order:
      x_ref                         (T*B_pad, D)   mxu_dtype, time-major, flattened
      per layer l: w_ih_l           (D_l, 4H)      mxu_dtype, gate order [i, f, o, g]
                   w_hh_l           (H,   4H)      mxu_dtype, gate order [i, f, o, g]
                   bias_l           (1,   4H)      f32, b_ih + b_hh, reordered
      fc_w                          (H, O)         mxu_dtype
      fc_b                          (1, O)         f32
      out                           (B_pad, O)     f32
      proj_scratch                  (T*B_pad, 4H)  f32 VMEM
      hseq_scratch                  (T*B_pad, H)   f32 VMEM
    """

    def kernel(*refs):
        x_ref = refs[0]
        layer_refs = refs[1:1 + 3 * num_layers]
        fc_w_ref = refs[1 + 3 * num_layers]
        fc_b_ref = refs[2 + 3 * num_layers]
        out_ref = refs[3 + 3 * num_layers]
        proj_ref = refs[4 + 3 * num_layers]
        hseq_ref = refs[5 + 3 * num_layers]

        h_last = None
        for l in range(num_layers):
            w_ih_ref = layer_refs[3 * l + 0]
            w_hh_ref = layer_refs[3 * l + 1]
            b_ref = layer_refs[3 * l + 2]

            # Batched input projection for the whole sequence: one big MXU
            # matmul (M = T*B_pad) plus a single bias broadcast per layer,
            # hoisted out of the time loop.
            if l == 0:
                layer_in = x_ref[...]                        # (T*B_pad, D)
            else:
                layer_in = hseq_ref[...].astype(mxu_dtype)   # (T*B_pad, H)
            proj_ref[...] = (
                jnp.dot(layer_in, w_ih_ref[...],
                        preferred_element_type=jnp.float32)
                + b_ref[...]
            )

            # Time recurrence: per step only h @ W_hh (no lane concatenate).
            def step(t, carry, l=l, w_hh_ref=w_hh_ref):
                h, c = carry                                  # (B_pad, H) f32
                off = pl.multiple_of(t * B_pad, B_pad)
                # Read W_hh from VMEM inside the dot; do NOT pin it in vregs
                # across the unrolled loop.
                gates = proj_ref[pl.ds(off, B_pad), :] + jnp.dot(
                    h.astype(mxu_dtype), w_hh_ref[...],
                    preferred_element_type=jnp.float32)       # (B_pad, 4H) f32
                # Gate order [i, f, o, g]: sigmoid over the contiguous 3H
                # block, tanh only over the last H block.
                sig = jax.nn.sigmoid(gates[:, :3 * H])
                g_g = jnp.tanh(gates[:, 3 * H:])
                i_g = sig[:, 0 * H:1 * H]
                f_g = sig[:, 1 * H:2 * H]
                o_g = sig[:, 2 * H:3 * H]
                # Post-matmul gate math stays float32 (v5e: no bf16 VPU/EUP).
                c_new = f_g * c + i_g * g_g
                h_new = o_g * jnp.tanh(c_new)
                if l < num_layers - 1:
                    # Hidden sequence feeds the next layer's batched projection.
                    hseq_ref[pl.ds(off, B_pad), :] = h_new
                return (h_new, c_new)
                # TODO(synk): if EUP is still the saturating slot after these
                # changes, derive sigmoid as 0.5*tanh(0.5x)+0.5 to collapse to
                # a single 4H-wide tanh pass per step.

            init = (jnp.zeros((B_pad, H), jnp.float32),
                    jnp.zeros((B_pad, H), jnp.float32))
            # TODO(synk): for large T, make time a grid axis over chunks with
            # (h, c) carried in VMEM scratch across grid steps ("arbitrary"
            # axis) and x streamed via BlockSpec, instead of full unroll with
            # the whole sequence resident in VMEM.
            h_last, _ = jax.lax.fori_loop(0, T, step, init, unroll=True)

        # Final Linear on the last layer's final hidden state: (B_pad, H)@(H, O).
        out_ref[...] = (
            jnp.dot(h_last.astype(mxu_dtype), fc_w_ref[...],
                    preferred_element_type=jnp.float32)
            + fc_b_ref[...]
        )

    return kernel


def prepare_kernel_params(params, mxu_dtype):
    """Torch-layout params -> kernel layout.

    * transpose weights to (D_l, 4H) / (H, 4H) so the matmul is x @ W
    * reorder gate columns from torch [i, f, g, o] to [i, f, o, g]
    * combine b_ih + b_hh into one (1, 4H) bias (kept float32)
    * cast matmul operands to mxu_dtype (bf16 fast path on v6e/v7x)
    """
    H = params["hidden_size"]
    perm = jnp.concatenate([
        jnp.arange(0 * H, 1 * H),    # i
        jnp.arange(1 * H, 2 * H),    # f
        jnp.arange(3 * H, 4 * H),    # o
        jnp.arange(2 * H, 3 * H),    # g
    ])
    layers = []
    for (w_ih, w_hh, b_ih, b_hh) in params["lstm_layers"]:
        w_ih_t = w_ih.T[:, perm].astype(mxu_dtype)             # (D_l, 4H)
        w_hh_t = w_hh.T[:, perm].astype(mxu_dtype)             # (H,   4H)
        bias = (b_ih + b_hh)[perm].reshape(1, 4 * H).astype(jnp.float32)
        layers.append((w_ih_t, w_hh_t, bias))
    fc_w_t = params["fc_w"].T.astype(mxu_dtype)                # (H, O)
    fc_b = params["fc_b"].reshape(1, -1).astype(jnp.float32)   # (1, O)
    return layers, fc_w_t, fc_b


def lstm_predict(x_btd, params, *, mxu_dtype=jnp.float32):
    """Full forward: multi-layer LSTM (zero init state) + Linear on h[-1].

    x_btd : (B, T, input_size), batch_first like torch.nn.LSTM.
    """
    B, T, D = x_btd.shape
    H = params["hidden_size"]
    num_layers = params["num_layers"]
    layers, fc_w_t, fc_b = prepare_kernel_params(params, mxu_dtype)
    O = fc_w_t.shape[1]

    # Pad batch to a full sublane group (8 rows f32 / 16 rows bf16) so per-step
    # MXU/VPU ops aren't sublane-starved; padded rows are discarded afterwards.
    pad_mult = 16 if mxu_dtype == jnp.bfloat16 else 8
    B_pad = ((B + pad_mult - 1) // pad_mult) * pad_mult

    # Time-major, batch-padded, flattened to (T*B_pad, D) so each layer's input
    # projection is a single M = T*B_pad matmul.
    x_tbd = jnp.transpose(x_btd, (1, 0, 2)).astype(jnp.float32)
    x_tbd = jnp.pad(x_tbd, ((0, 0), (0, B_pad - B), (0, 0)))
    x2d = x_tbd.reshape(T * B_pad, D).astype(mxu_dtype)

    args = [x2d]
    for (w_ih_t, w_hh_t, bias) in layers:
        args.extend((w_ih_t, w_hh_t, bias))
    args.extend((fc_w_t, fc_b))

    kernel = _make_fused_lstm_kernel(num_layers, T, B_pad, H, O, mxu_dtype)

    vmem = pltpu.MemorySpace.VMEM
    out_padded = pl.pallas_call(
        kernel,
        out_shape=jax.ShapeDtypeStruct((B_pad, O), jnp.float32),
        in_specs=[pl.BlockSpec(memory_space=vmem) for _ in args],
        out_specs=pl.BlockSpec(memory_space=vmem),
        scratch_shapes=[
            pltpu.VMEM((T * B_pad, 4 * H), jnp.float32),   # per-layer input projection
            pltpu.VMEM((T * B_pad, H), jnp.float32),       # hidden seq for next layer
        ],
        compiler_params=pltpu.CompilerParams(
            # Explicit VMEM budget with headroom under v7x's 64 MiB physical.
            vmem_limit_bytes=32 * 1024 * 1024,
        ),
    )(*args)
    # TODO(synk): when B grows on v7x, add a leading batch grid axis marked
    # "parallel" so the two TensorCores each run half the batch's recurrence.
    return out_padded[:B]


def make_params(key, input_size, hidden_size, num_layers):
    """Deterministic synthetic params in torch.nn.LSTM layout & gate order."""
    H = hidden_size
    bound = 1.0 / (hidden_size ** 0.5)
    layers = []
    for layer in range(num_layers):
        d_in = input_size if layer == 0 else hidden_size
        key, k1, k2, k3, k4 = jax.random.split(key, 5)
        w_ih = jax.random.uniform(k1, (4 * H, d_in), jnp.float32, -bound, bound)
        w_hh = jax.random.uniform(k2, (4 * H, H), jnp.float32, -bound, bound)
        b_ih = jax.random.uniform(k3, (4 * H,), jnp.float32, -bound, bound)
        b_hh = jax.random.uniform(k4, (4 * H,), jnp.float32, -bound, bound)
        layers.append((w_ih, w_hh, b_ih, b_hh))
    key, k5, k6 = jax.random.split(key, 3)
    fc_w = jax.random.uniform(k5, (2, H), jnp.float32, -bound, bound)
    fc_b = jax.random.uniform(k6, (2,), jnp.float32, -bound, bound)
    return {"lstm_layers": layers, "fc_w": fc_w, "fc_b": fc_b,
            "hidden_size": H, "input_size": input_size,
            "num_layers": num_layers}


def lstm_predict_ref(x_btd, params):
    """Pure-JAX f32 reference (lax.scan) mirroring torch.nn.LSTM semantics."""
    H = params["hidden_size"]
    x = jnp.transpose(x_btd, (1, 0, 2)).astype(jnp.float32)   # (T, B, D)
    B = x.shape[1]
    for (w_ih, w_hh, b_ih, b_hh) in params["lstm_layers"]:
        bias = b_ih + b_hh

        def step(carry, xt, w_ih=w_ih, w_hh=w_hh, bias=bias):
            h, c = carry
            g = xt @ w_ih.T + h @ w_hh.T + bias
            i = jax.nn.sigmoid(g[:, 0 * H:1 * H])
            f = jax.nn.sigmoid(g[:, 1 * H:2 * H])
            gg = jnp.tanh(g[:, 2 * H:3 * H])
            o = jax.nn.sigmoid(g[:, 3 * H:4 * H])
            c = f * c + i * gg
            h = o * jnp.tanh(c)
            return (h, c), h

        init = (jnp.zeros((B, H), jnp.float32), jnp.zeros((B, H), jnp.float32))
        _, x = jax.lax.scan(step, init, x)
    h_last = x[-1]
    return h_last @ params["fc_w"].T + params["fc_b"].reshape(1, -1)


if __name__ == "__main__":
    B, T, INPUT_SIZE, HIDDEN, NUM_LAYERS = 2, 8, 16, 32, 2

    key = jax.random.PRNGKey(0)
    kx, kp = jax.random.split(key)
    x = jax.random.normal(kx, (B, T, INPUT_SIZE), jnp.float32)
    params = make_params(kp, INPUT_SIZE, HIDDEN, NUM_LAYERS)

    ref = jax.block_until_ready(lstm_predict_ref(x, params))

    # f32 MXU path: tight tolerance against the f32 reference.
    out_f32 = jax.block_until_ready(lstm_predict(x, params))
    assert out_f32.shape == (B, 2), out_f32.shape
    assert jnp.allclose(out_f32, ref, atol=1e-5, rtol=1e-5), (out_f32, ref)

    # bf16 MXU path (native fast path on v6e/v7x; f32 accumulation, f32 gate
    # math): relaxed tolerance vs. the f32 reference.
    out_bf16 = jax.block_until_ready(
        lstm_predict(x, params, mxu_dtype=jnp.bfloat16))
    assert out_bf16.shape == (B, 2), out_bf16.shape
    assert jnp.allclose(out_bf16, ref, atol=5e-2, rtol=5e-2), (out_bf16, ref)

    print("KERNEL_OK")
</pallas_src>

<mosaic_0001>
module attributes {stable_mosaic.version = 11 : i64} {
  func.func @kernel(%arg0: memref<64x16xf32, #tpu.memory_space<vmem>>, %arg1: memref<16x128xf32, #tpu.memory_space<vmem>>, %arg2: memref<32x128xf32, #tpu.memory_space<vmem>>, %arg3: memref<1x128xf32, #tpu.memory_space<vmem>>, %arg4: memref<32x128xf32, #tpu.memory_space<vmem>>, %arg5: memref<32x128xf32, #tpu.memory_space<vmem>>, %arg6: memref<1x128xf32, #tpu.memory_space<vmem>>, %arg7: memref<32x2xf32, #tpu.memory_space<vmem>>, %arg8: memref<1x2xf32, #tpu.memory_space<vmem>>, %arg9: memref<8x2xf32, #tpu.memory_space<vmem>>, %arg10: memref<64x128xf32, #tpu.memory_space<vmem>>, %arg11: memref<64x32xf32, #tpu.memory_space<vmem>>) attributes {dimension_semantics = [], scalar_prefetch = 0 : i64, scratch_operands = 2 : i64, tpu.core_type = #tpu.core_type<tc>} {
    %c0 = arith.constant 0 : index
    %c0_0 = arith.constant 0 : index
    %0 = vector.load %arg0[%c0, %c0_0] : memref<64x16xf32, #tpu.memory_space<vmem>>, vector<64x16xf32>
    %c0_1 = arith.constant 0 : index
    %c0_2 = arith.constant 0 : index
    %1 = vector.load %arg1[%c0_1, %c0_2] : memref<16x128xf32, #tpu.memory_space<vmem>>, vector<16x128xf32>
    %cst = arith.constant dense<0.000000e+00> : vector<64x128xf32>
    %2 = tpu.matmul %0, %1, %cst {dimension_numbers = #tpu.dot_dimension_numbers<[1], [0], [0], [1], [0, 0, 1, 1], [], []>} : vector<64x16xf32>, vector<16x128xf32>, vector<64x128xf32> -> vector<64x128xf32>
    %c0_3 = arith.constant 0 : index
    %c0_4 = arith.constant 0 : index
    %3 = vector.load %arg3[%c0_3, %c0_4] : memref<1x128xf32, #tpu.memory_space<vmem>>, vector<1x128xf32>
    %4 = vector.broadcast %3 : vector<1x128xf32> to vector<64x128xf32>
    %5 = arith.addf %2, %4 : vector<64x128xf32>
    %c0_5 = arith.constant 0 : index
    %c0_6 = arith.constant 0 : index
    %6 = vector.load %arg10[%c0_5, %c0_6] : memref<64x128xf32, #tpu.memory_space<vmem>>, vector<64x128xf32>
    tpu.vector_store %arg10[%c0_5, %c0_6], %5 {strides = array<i32>} : memref<64x128xf32, #tpu.memory_space<vmem>>, vector<64x128xf32>,
    %cst_7 = arith.constant 0.000000e+00 : f32
    %7 = vector.broadcast %cst_7 : f32 to vector<8x32xf32>
    %cst_8 = arith.constant 0.000000e+00 : f32
    %8 = vector.broadcast %cst_8 : f32 to vector<8x32xf32>
    %c0_i32 = arith.constant 0 : i32
    %c8_i32 = arith.constant 8 : i32
    %9 = arith.muli %c0_i32, %c8_i32 : i32
    %10 = tpu.assume_multiple %9, 8 : i32
    %11 = arith.index_cast %10 : i32 to index
    %c0_9 = arith.constant 0 : index
    %12 = vector.load %arg10[%11, %c0_9] : memref<64x128xf32, #tpu.memory_space<vmem>>, vector<8x128xf32>
    %c0_10 = arith.constant 0 : index
    %c0_11 = arith.constant 0 : index
    %13 = vector.load %arg2[%c0_10, %c0_11] : memref<32x128xf32, #tpu.memory_space<vmem>>, vector<32x128xf32>
    %cst_12 = arith.constant dense<0.000000e+00> : vector<8x128xf32>
    %14 = tpu.matmul %7, %13, %cst_12 {dimension_numbers = #tpu.dot_dimension_numbers<[1], [0], [0], [1], [0, 0, 1, 1], [], []>} : vector<8x32xf32>, vector<32x128xf32>, vector<8x128xf32> -> vector<8x128xf32>
    %15 = arith.addf %12, %14 : vector<8x128xf32>
    %16 = vector.extract_strided_slice %15 {offsets = [0, 0], sizes = [8, 96], strides = [1, 1]} : vector<8x128xf32> to vector<8x96xf32>
    %17 = arith.negf %16 : vector<8x96xf32>
    %18 = math.exp %17 : vector<8x96xf32>
    %cst_13 = arith.constant 1.000000e+00 : f32
    %19 = vector.broadcast %cst_13 : f32 to vector<8x96xf32>
    %20 = arith.addf %19, %18 : vector<8x96xf32>
    %21 = arith.divf %19, %20 : vector<8x96xf32>
    %22 = vector.extract_strided_slice %15 {offsets = [0, 96], sizes = [8, 32], strides = [1, 1]} : vector<8x128xf32> to vector<8x32xf32>
    %23 = math.tanh %22 : vector<8x32xf32>
    %24 = vector.extract_strided_slice %21 {offsets = [0, 0], sizes = [8, 32], strides = [1, 1]} : vector<8x96xf32> to vector<8x32xf32>
    %25 = vector.extract_strided_slice %21 {offsets = [0, 32], sizes = [8, 32], strides = [1, 1]} : vector<8x96xf32> to vector<8x32xf32>
    %26 = vector.extract_strided_slice %21 {offsets = [0, 64], sizes = [8, 32], strides = [1, 1]} : vector<8x96xf32> to vector<8x32xf32>
    %27 = arith.mulf %25, %8 : vector<8x32xf32>
    %28 = arith.mulf %24, %23 : vector<8x32xf32>
    %29 = arith.addf %27, %28 : vector<8x32xf32>
    %30 = math.tanh %29 : vector<8x32xf32>
    %31 = arith.mulf %26, %30 : vector<8x32xf32>
    %32 = arith.index_cast %10 : i32 to index
    %c0_14 = arith.constant 0 : index
    %33 = vector.load %arg11[%32, %c0_14] : memref<64x32xf32, #tpu.memory_space<vmem>>, vector<8x32xf32>
    tpu.vector_store %arg11[%32, %c0_14], %31 {strides = array<i32>} : memref<64x32xf32, #tpu.memory_space<vmem>>, vector<8x32xf32>,
    %c1_i32 = arith.constant 1 : i32
    %c8_i32_15 = arith.constant 8 : i32
    %34 = arith.muli %c1_i32, %c8_i32_15 : i32
    %35 = tpu.assume_multiple %34, 8 : i32
    %36 = arith.index_cast %35 : i32 to index
    %c0_16 = arith.constant 0 : index
    %37 = vector.load %arg10[%36, %c0_16] : memref<64x128xf32, #tpu.memory_space<vmem>>, vector<8x128xf32>
    %c0_17 = arith.constant 0 : index
    %c0_18 = arith.constant 0 : index
    %38 = vector.load %arg2[%c0_17, %c0_18] : memref<32x128xf32, #tpu.memory_space<vmem>>, vector<32x128xf32>
    %cst_19 = arith.constant dense<0.000000e+00> : vector<8x128xf32>
    %39 = tpu.matmul %31, %38, %cst_19 {dimension_numbers = #tpu.dot_dimension_numbers<[1], [0], [0], [1], [0, 0, 1, 1], [], []>} : vector<8x32xf32>, vector<32x128xf32>, vector<8x128xf32> -> vector<8x128xf32>
    %40 = arith.addf %37, %39 : vector<8x128xf32>
    %41 = vector.extract_strided_slice %40 {offsets = [0, 0], sizes = [8, 96], strides = [1, 1]} : vector<8x128xf32> to vector<8x96xf32>
    %42 = arith.negf %41 : vector<8x96xf32>
    %43 = math.exp %42 : vector<8x96xf32>
    %cst_20 = arith.constant 1.000000e+00 : f32
    %44 = vector.broadcast %cst_20 : f32 to vector<8x96xf32>
    %45 = arith.addf %44, %43 : vector<8x96xf32>
    %46 = arith.divf %44, %45 : vector<8x96xf32>
    %47 = vector.extract_strided_slice %40 {offsets = [0, 96], sizes = [8, 32], strides = [1, 1]} : vector<8x128xf32> to vector<8x32xf32>
    %48 = math.tanh %47 : vector<8x32xf32>
    %49 = vector.extract_strided_slice %46 {offsets = [0, 0], sizes = [8, 32], strides = [1, 1]} : vector<8x96xf32> to vector<8x32xf32>
    %50 = vector.extract_strided_slice %46 {offsets = [0, 32], sizes = [8, 32], strides = [1, 1]} : vector<8x96xf32> to vector<8x32xf32>
    %51 = vector.extract_strided_slice %46 {offsets = [0, 64], sizes = [8, 32], strides = [1, 1]} : vector<8x96xf32> to vector<8x32xf32>
    %52 = arith.mulf %50, %29 : vector<8x32xf32>
    %53 = arith.mulf %49, %48 : vector<8x32xf32>
    %54 = arith.addf %52, %53 : vector<8x32xf32>
    %55 = math.tanh %54 : vector<8x32xf32>
    %56 = arith.mulf %51, %55 : vector<8x32xf32>
    %57 = arith.index_cast %35 : i32 to index
    %c0_21 = arith.constant 0 : index
    %58 = vector.load %arg11[%57, %c0_21] : memref<64x32xf32, #tpu.memory_space<vmem>>, vector<8x32xf32>
    tpu.vector_store %arg11[%57, %c0_21], %56 {strides = array<i32>} : memref<64x32xf32, #tpu.memory_space<vmem>>, vector<8x32xf32>,
    %c2_i32 = arith.constant 2 : i32
    %c8_i32_22 = arith.constant 8 : i32
    %59 = arith.muli %c2_i32, %c8_i32_22 : i32
    %60 = tpu.assume_multiple %59, 8 : i32
    %61 = arith.index_cast %60 : i32 to index
    %c0_23 = arith.constant 0 : index
    %62 = vector.load %arg10[%61, %c0_23] : memref<64x128xf32, #tpu.memory_space<vmem>>, vector<8x128xf32>
    %c0_24 = arith.constant 0 : index
    %c0_25 = arith.constant 0 : index
    %63 = vector.load %arg2[%c0_24, %c0_25] : memref<32x128xf32, #tpu.memory_space<vmem>>, vector<32x128xf32>
    %cst_26 = arith.constant dense<0.000000e+00> : vector<8x128xf32>
    %64 = tpu.matmul %56, %63, %cst_26 {dimension_numbers = #tpu.dot_dimension_numbers<[1], [0], [0], [1], [0, 0, 1, 1], [], []>} : vector<8x32xf32>, vector<32x128xf32>, vector<8x128xf32> -> vector<8x128xf32>
    %65 = arith.addf %62, %64 : vector<8x128xf32>
    %66 = vector.extract_strided_slice %65 {offsets = [0, 0], sizes = [8, 96], strides = [1, 1]} : vector<8x128xf32> to vector<8x96xf32>
    %67 = arith.negf %66 : vector<8x96xf32>
    %68 = math.exp %67 : vector<8x96xf32>
    %cst_27 = arith.constant 1.000000e+00 : f32
    %69 = vector.broadcast %cst_27 : f32 to vector<8x96xf32>
    %70 = arith.addf %69, %68 : vector<8x96xf32>
    %71 = arith.divf %69, %70 : vector<8x96xf32>
    %72 = vector.extract_strided_slice %65 {offsets = [0, 96], sizes = [8, 32], strides = [1, 1]} : vector<8x128xf32> to vector<8x32xf32>
    %73 = math.tanh %72 : vector<8x32xf32>
    %74 = vector.extract_strided_slice %71 {offsets = [0, 0], sizes = [8, 32], strides = [1, 1]} : vector<8x96xf32> to vector<8x32xf32>
    %75 = vector.extract_strided_slice %71 {offsets = [0, 32], sizes = [8, 32], strides = [1, 1]} : vector<8x96xf32> to vector<8x32xf32>
    %76 = vector.extract_strided_slice %71 {offsets = [0, 64], sizes = [8, 32], strides = [1, 1]} : vector<8x96xf32> to vector<8x32xf32>
    %77 = arith.mulf %75, %54 : vector<8x32xf32>
    %78 = arith.mulf %74, %73 : vector<8x32xf32>
    %79 = arith.addf %77, %78 : vector<8x32xf32>
    %80 = math.tanh %79 : vector<8x32xf32>
    %81 = arith.mulf %76, %80 : vector<8x32xf32>
    %82 = arith.index_cast %60 : i32 to index
    %c0_28 = arith.constant 0 : index
    %83 = vector.load %arg11[%82, %c0_28] : memref<64x32xf32, #tpu.memory_space<vmem>>, vector<8x32xf32>
    tpu.vector_store %arg11[%82, %c0_28], %81 {strides = array<i32>} : memref<64x32xf32, #tpu.memory_space<vmem>>, vector<8x32xf32>,
    %c3_i32 = arith.constant 3 : i32
    %c8_i32_29 = arith.constant 8 : i32
    %84 = arith.muli %c3_i32, %c8_i32_29 : i32
    %85 = tpu.assume_multiple %84, 8 : i32
    %86 = arith.index_cast %85 : i32 to index
    %c0_30 = arith.constant 0 : index
    %87 = vector.load %arg10[%86, %c0_30] : memref<64x128xf32, #tpu.memory_space<vmem>>, vector<8x128xf32>
    %c0_31 = arith.constant 0 : index
    %c0_32 = arith.constant 0 : index
    %88 = vector.load %arg2[%c0_31, %c0_32] : memref<32x128xf32, #tpu.memory_space<vmem>>, vector<32x128xf32>
    %cst_33 = arith.constant dense<0.000000e+00> : vector<8x128xf32>
    %89 = tpu.matmul %81, %88, %cst_33 {dimension_numbers = #tpu.dot_dimension_numbers<[1], [0], [0], [1], [0, 0, 1, 1], [], []>} : vector<8x32xf32>, vector<32x128xf32>, vector<8x128xf32> -> vector<8x128xf32>
    %90 = arith.addf %87, %89 : vector<8x128xf32>
    %91 = vector.extract_strided_slice %90 {offsets = [0, 0], sizes = [8, 96], strides = [1, 1]} : vector<8x128xf32> to vector<8x96xf32>
    %92 = arith.negf %91 : vector<8x96xf32>
    %93 = math.exp %92 : vector<8x96xf32>
    %cst_34 = arith.constant 1.000000e+00 : f32
    %94 = vector.broadcast %cst_34 : f32 to vector<8x96xf32>
    %95 = arith.addf %94, %93 : vector<8x96xf32>
    %96 = arith.divf %94, %95 : vector<8x96xf32>
    %97 = vector.extract_strided_slice %90 {offsets = [0, 96], sizes = [8, 32], strides = [1, 1]} : vector<8x128xf32> to vector<8x32xf32>
    %98 = math.tanh %97 : vector<8x32xf32>
    %99 = vector.extract_strided_slice %96 {offsets = [0, 0], sizes = [8, 32], strides = [1, 1]} : vector<8x96xf32> to vector<8x32xf32>
    %100 = vector.extract_strided_slice %96 {offsets = [0, 32], sizes = [8, 32], strides = [1, 1]} : vector<8x96xf32> to vector<8x32xf32>
    %101 = vector.extract_strided_slice %96 {offsets = [0, 64], sizes = [8, 32], strides = [1, 1]} : vector<8x96xf32> to vector<8x32xf32>
    %102 = arith.mulf %100, %79 : vector<8x32xf32>
    %103 = arith.mulf %99, %98 : vector<8x32xf32>
    %104 = arith.addf %102, %103 : vector<8x32xf32>
    %105 = math.tanh %104 : vector<8x32xf32>
    %106 = arith.mulf %101, %105 : vector<8x32xf32>
    %107 = arith.index_cast %85 : i32 to index
    %c0_35 = arith.constant 0 : index
    %108 = vector.load %arg11[%107, %c0_35] : memref<64x32xf32, #tpu.memory_space<vmem>>, vector<8x32xf32>
    tpu.vector_store %arg11[%107, %c0_35], %106 {strides = array<i32>} : memref<64x32xf32, #tpu.memory_space<vmem>>, vector<8x32xf32>,
    %c4_i32 = arith.constant 4 : i32
    %c8_i32_36 = arith.constant 8 : i32
    %109 = arith.muli %c4_i32, %c8_i32_36 : i32
    %110 = tpu.assume_multiple %109, 8 : i32
    %111 = arith.index_cast %110 : i32 to index
    %c0_37 = arith.constant 0 : index
    %112 = vector.load %arg10[%111, %c0_37] : memref<64x128xf32, #tpu.memory_space<vmem>>, vector<8x128xf32>
    %c0_38 = arith.constant 0 : index
    %c0_39 = arith.constant 0 : index
    %113 = vector.load %arg2[%c0_38, %c0_39] : memref<32x128xf32, #tpu.memory_space<vmem>>, vector<32x128xf32>
    %cst_40 = arith.constant dense<0.000000e+00> : vector<8x128xf32>
    %114 = tpu.matmul %106, %113, %cst_40 {dimension_numbers = #tpu.dot_dimension_numbers<[1], [0], [0], [1], [0, 0, 1, 1], [], []>} : vector<8x32xf32>, vector<32x128xf32>, vector<8x128xf32> -> vector<8x128xf32>
    %115 = arith.addf %112, %114 : vector<8x128xf32>
    %116 = vector.extract_strided_slice %115 {offsets = [0, 0], sizes = [8, 96], strides = [1, 1]} : vector<8x128xf32> to vector<8x96xf32>
    %117 = arith.negf %116 : vector<8x96xf32>
    %118 = math.exp %117 : vector<8x96xf32>
    %cst_41 = arith.constant 1.000000e+00 : f32
    %119 = vector.broadcast %cst_41 : f32 to vector<8x96xf32>
    %120 = arith.addf %119, %118 : vector<8x96xf32>
    %121 = arith.divf %119, %120 : vector<8x96xf32>
    %122 = vector.extract_strided_slice %115 {offsets = [0, 96], sizes = [8, 32], strides = [1, 1]} : vector<8x128xf32> to vector<8x32xf32>
    %123 = math.tanh %122 : vector<8x32xf32>
    %124 = vector.extract_strided_slice %121 {offsets = [0, 0], sizes = [8, 32], strides = [1, 1]} : vector<8x96xf32> to vector<8x32xf32>
    %125 = vector.extract_strided_slice %121 {offsets = [0, 32], sizes = [8, 32], strides = [1, 1]} : vector<8x96xf32> to vector<8x32xf32>
    %126 = vector.extract_strided_slice %121 {offsets = [0, 64], sizes = [8, 32], strides = [1, 1]} : vector<8x96xf32> to vector<8x32xf32>
    %127 = arith.mulf %125, %104 : vector<8x32xf32>
    %128 = arith.mulf %124, %123 : vector<8x32xf32>
    %129 = arith.addf %127, %128 : vector<8x32xf32>
    %130 = math.tanh %129 : vector<8x32xf32>
    %131 = arith.mulf %126, %130 : vector<8x32xf32>
    %132 = arith.index_cast %110 : i32 to index
    %c0_42 = arith.constant 0 : index
    %133 = vector.load %arg11[%132, %c0_42] : memref<64x32xf32, #tpu.memory_space<vmem>>, vector<8x32xf32>
    tpu.vector_store %arg11[%132, %c0_42], %131 {strides = array<i32>} : memref<64x32xf32, #tpu.memory_space<vmem>>, vector<8x32xf32>,
    %c5_i32 = arith.constant 5 : i32
    %c8_i32_43 = arith.constant 8 : i32
    %134 = arith.muli %c5_i32, %c8_i32_43 : i32
    %135 = tpu.assume_multiple %134, 8 : i32
    %136 = arith.index_cast %135 : i32 to index
    %c0_44 = arith.constant 0 : index
    %137 = vector.load %arg10[%136, %c0_44] : memref<64x128xf32, #tpu.memory_space<vmem>>, vector<8x128xf32>
    %c0_45 = arith.constant 0 : index
    %c0_46 = arith.constant 0 : index
    %138 = vector.load %arg2[%c0_45, %c0_46] : memref<32x128xf32, #tpu.memory_space<vmem>>, vector<32x128xf32>
    %cst_47 = arith.constant dense<0.000000e+00> : vector<8x128xf32>
    %139 = tpu.matmul %131, %138, %cst_47 {dimension_numbers = #tpu.dot_dimension_numbers<[1], [0], [0], [1], [0, 0, 1, 1], [], []>} : vector<8x32xf32>, vector<32x128xf32>, vector<8x128xf32> -> vector<8x128xf32>
    %140 = arith.addf %137, %139 : vector<8x128xf32>
    %141 = vector.extract_strided_slice %140 {offsets = [0, 0], sizes = [8, 96], strides = [1, 1]} : vector<8x128xf32> to vector<8x96xf32>
    %142 = arith.negf %141 : vector<8x96xf32>
    %143 = math.exp %142 : vector<8x96xf32>
    %cst_48 = arith.constant 1.000000e+00 : f32
    %144 = vector.broadcast %cst_48 : f32 to vector<8x96xf32>
    %145 = arith.addf %144, %143 : vector<8x96xf32>
    %146 = arith.divf %144, %145 : vector<8x96xf32>
    %147 = vector.extract_strided_slice %140 {offsets = [0, 96], sizes = [8, 32], strides = [1, 1]} : vector<8x128xf32> to vector<8x32xf32>
    %148 = math.tanh %147 : vector<8x32xf32>
    %149 = vector.extract_strided_slice %146 {offsets = [0, 0], sizes = [8, 32], strides = [1, 1]} : vector<8x96xf32> to vector<8x32xf32>
    %150 = vector.extract_strided_slice %146 {offsets = [0, 32], sizes = [8, 32], strides = [1, 1]} : vector<8x96xf32> to vector<8x32xf32>
    %151 = vector.extract_strided_slice %146 {offsets = [0, 64], sizes = [8, 32], strides = [1, 1]} : vector<8x96xf32> to vector<8x32xf32>
    %152 = arith.mulf %150, %129 : vector<8x32xf32>
    %153 = arith.mulf %149, %148 : vector<8x32xf32>
    %154 = arith.addf %152, %153 : vector<8x32xf32>
    %155 = math.tanh %154 : vector<8x32xf32>
    %156 = arith.mulf %151, %155 : vector<8x32xf32>
    %157 = arith.index_cast %135 : i32 to index
    %c0_49 = arith.constant 0 : index
    %158 = vector.load %arg11[%157, %c0_49] : memref<64x32xf32, #tpu.memory_space<vmem>>, vector<8x32xf32>
    tpu.vector_store %arg11[%157, %c0_49], %156 {strides = array<i32>} : memref<64x32xf32, #tpu.memory_space<vmem>>, vector<8x32xf32>,
    %c6_i32 = arith.constant 6 : i32
    %c8_i32_50 = arith.constant 8 : i32
    %159 = arith.muli %c6_i32, %c8_i32_50 : i32
    %160 = tpu.assume_multiple %159, 8 : i32
    %161 = arith.index_cast %160 : i32 to index
    %c0_51 = arith.constant 0 : index
    %162 = vector.load %arg10[%161, %c0_51] : memref<64x128xf32, #tpu.memory_space<vmem>>, vector<8x128xf32>
    %c0_52 = arith.constant 0 : index
    %c0_53 = arith.constant 0 : index
    %163 = vector.load %arg2[%c0_52, %c0_53] : memref<32x128xf32, #tpu.memory_space<vmem>>, vector<32x128xf32>
    %cst_54 = arith.constant dense<0.000000e+00> : vector<8x128xf32>
    %164 = tpu.matmul %156, %163, %cst_54 {dimension_numbers = #tpu.dot_dimension_numbers<[1], [0], [0], [1], [0, 0, 1, 1], [], []>} : vector<8x32xf32>, vector<32x128xf32>, vector<8x128xf32> -> vector<8x128xf32>
    %165 = arith.addf %162, %164 : vector<8x128xf32>
    %166 = vector.extract_strided_slice %165 {offsets = [0, 0], sizes = [8, 96], strides = [1, 1]} : vector<8x128xf32> to vector<8x96xf32>
    %167 = arith.negf %166 : vector<8x96xf32>
    %168 = math.exp %167 : vector<8x96xf32>
    %cst_55 = arith.constant 1.000000e+00 : f32
    %169 = vector.broadcast %cst_55 : f32 to vector<8x96xf32>
    %170 = arith.addf %169, %168 : vector<8x96xf32>
    %171 = arith.divf %169, %170 : vector<8x96xf32>
    %172 = vector.extract_strided_slice %165 {offsets = [0, 96], sizes = [8, 32], strides = [1, 1]} : vector<8x128xf32> to vector<8x32xf32>
    %173 = math.tanh %172 : vector<8x32xf32>
    %174 = vector.extract_strided_slice %171 {offsets = [0, 0], sizes = [8, 32], strides = [1, 1]} : vector<8x96xf32> to vector<8x32xf32>
    %175 = vector.extract_strided_slice %171 {offsets = [0, 32], sizes = [8, 32], strides = [1, 1]} : vector<8x96xf32> to vector<8x32xf32>
    %176 = vector.extract_strided_slice %171 {offsets = [0, 64], sizes = [8, 32], strides = [1, 1]} : vector<8x96xf32> to vector<8x32xf32>
    %177 = arith.mulf %175, %154 : vector<8x32xf32>
    %178 = arith.mulf %174, %173 : vector<8x32xf32>
    %179 = arith.addf %177, %178 : vector<8x32xf32>
    %180 = math.tanh %179 : vector<8x32xf32>
    %181 = arith.mulf %176, %180 : vector<8x32xf32>
    %182 = arith.index_cast %160 : i32 to index
    %c0_56 = arith.constant 0 : index
    %183 = vector.load %arg11[%182, %c0_56] : memref<64x32xf32, #tpu.memory_space<vmem>>, vector<8x32xf32>
    tpu.vector_store %arg11[%182, %c0_56], %181 {strides = array<i32>} : memref<64x32xf32, #tpu.memory_space<vmem>>, vector<8x32xf32>,
    %c7_i32 = arith.constant 7 : i32
    %c8_i32_57 = arith.constant 8 : i32
    %184 = arith.muli %c7_i32, %c8_i32_57 : i32
    %185 = tpu.assume_multiple %184, 8 : i32
    %186 = arith.index_cast %185 : i32 to index
    %c0_58 = arith.constant 0 : index
    %187 = vector.load %arg10[%186, %c0_58] : memref<64x128xf32, #tpu.memory_space<vmem>>, vector<8x128xf32>
    %c0_59 = arith.constant 0 : index
    %c0_60 = arith.constant 0 : index
    %188 = vector.load %arg2[%c0_59, %c0_60] : memref<32x128xf32, #tpu.memory_space<vmem>>, vector<32x128xf32>
    %cst_61 = arith.constant dense<0.000000e+00> : vector<8x128xf32>
    %189 = tpu.matmul %181, %188, %cst_61 {dimension_numbers = #tpu.dot_dimension_numbers<[1], [0], [0], [1], [0, 0, 1, 1], [], []>} : vector<8x32xf32>, vector<32x128xf32>, vector<8x128xf32> -> vector<8x128xf32>
    %190 = arith.addf %187, %189 : vector<8x128xf32>
    %191 = vector.extract_strided_slice %190 {offsets = [0, 0], sizes = [8, 96], strides = [1, 1]} : vector<8x128xf32> to vector<8x96xf32>
    %192 = arith.negf %191 : vector<8x96xf32>
    %193 = math.exp %192 : vector<8x96xf32>
    %cst_62 = arith.constant 1.000000e+00 : f32
    %194 = vector.broadcast %cst_62 : f32 to vector<8x96xf32>
    %195 = arith.addf %194, %193 : vector<8x96xf32>
    %196 = arith.divf %194, %195 : vector<8x96xf32>
    %197 = vector.extract_strided_slice %190 {offsets = [0, 96], sizes = [8, 32], strides = [1, 1]} : vector<8x128xf32> to vector<8x32xf32>
    %198 = math.tanh %197 : vector<8x32xf32>
    %199 = vector.extract_strided_slice %196 {offsets = [0, 0], sizes = [8, 32], strides = [1, 1]} : vector<8x96xf32> to vector<8x32xf32>
    %200 = vector.extract_strided_slice %196 {offsets = [0, 32], sizes = [8, 32], strides = [1, 1]} : vector<8x96xf32> to vector<8x32xf32>
    %201 = vector.extract_strided_slice %196 {offsets = [0, 64], sizes = [8, 32], strides = [1, 1]} : vector<8x96xf32> to vector<8x32xf32>
    %202 = arith.mulf %200, %179 : vector<8x32xf32>
    %203 = arith.mulf %199, %198 : vector<8x32xf32>
    %204 = arith.addf %202, %203 : vector<8x32xf32>
    %205 = math.tanh %204 : vector<8x32xf32>
    %206 = arith.mulf %201, %205 : vector<8x32xf32>
    %207 = arith.index_cast %185 : i32 to index
    %c0_63 = arith.constant 0 : index
    %208 = vector.load %arg11[%207, %c0_63] : memref<64x32xf32, #tpu.memory_space<vmem>>, vector<8x32xf32>
    tpu.vector_store %arg11[%207, %c0_63], %206 {strides = array<i32>} : memref<64x32xf32, #tpu.memory_space<vmem>>, vector<8x32xf32>,
    %c8_i32_64 = arith.constant 8 : i32
    %c0_65 = arith.constant 0 : index
    %c0_66 = arith.constant 0 : index
    %209 = vector.load %arg11[%c0_65, %c0_66] : memref<64x32xf32, #tpu.memory_space<vmem>>, vector<64x32xf32>
    %c0_67 = arith.constant 0 : index
    %c0_68 = arith.constant 0 : index
    %210 = vector.load %arg4[%c0_67, %c0_68] : memref<32x128xf32, #tpu.memory_space<vmem>>, vector<32x128xf32>
    %cst_69 = arith.constant dense<0.000000e+00> : vector<64x128xf32>
    %211 = tpu.matmul %209, %210, %cst_69 {dimension_numbers = #tpu.dot_dimension_numbers<[1], [0], [0], [1], [0, 0, 1, 1], [], []>} : vector<64x32xf32>, vector<32x128xf32>, vector<64x128xf32> -> vector<64x128xf32>
    %c0_70 = arith.constant 0 : index
    %c0_71 = arith.constant 0 : index
    %212 = vector.load %arg6[%c0_70, %c0_71] : memref<1x128xf32, #tpu.memory_space<vmem>>, vector<1x128xf32>
    %213 = vector.broadcast %212 : vector<1x128xf32> to vector<64x128xf32>
    %214 = arith.addf %211, %213 : vector<64x128xf32>
    %c0_72 = arith.constant 0 : index
    %c0_73 = arith.constant 0 : index
    %215 = vector.load %arg10[%c0_72, %c0_73] : memref<64x128xf32, #tpu.memory_space<vmem>>, vector<64x128xf32>
    tpu.vector_store %arg10[%c0_72, %c0_73], %214 {strides = array<i32>} : memref<64x128xf32, #tpu.memory_space<vmem>>, vector<64x128xf32>,
    %cst_74 = arith.constant 0.000000e+00 : f32
    %216 = vector.broadcast %cst_74 : f32 to vector<8x32xf32>
    %cst_75 = arith.constant 0.000000e+00 : f32
    %217 = vector.broadcast %cst_75 : f32 to vector<8x32xf32>
    %c0_i32_76 = arith.constant 0 : i32
    %c8_i32_77 = arith.constant 8 : i32
    %218 = arith.muli %c0_i32_76, %c8_i32_77 : i32
    %219 = tpu.assume_multiple %218, 8 : i32
    %220 = arith.index_cast %219 : i32 to index
    %c0_78 = arith.constant 0 : index
    %221 = vector.load %arg10[%220, %c0_78] : memref<64x128xf32, #tpu.memory_space<vmem>>, vector<8x128xf32>
    %c0_79 = arith.constant 0 : index
    %c0_80 = arith.constant 0 : index
    %222 = vector.load %arg5[%c0_79, %c0_80] : memref<32x128xf32, #tpu.memory_space<vmem>>, vector<32x128xf32>
    %cst_81 = arith.constant dense<0.000000e+00> : vector<8x128xf32>
    %223 = tpu.matmul %216, %222, %cst_81 {dimension_numbers = #tpu.dot_dimension_numbers<[1], [0], [0], [1], [0, 0, 1, 1], [], []>} : vector<8x32xf32>, vector<32x128xf32>, vector<8x128xf32> -> vector<8x128xf32>
    %224 = arith.addf %221, %223 : vector<8x128xf32>
    %225 = vector.extract_strided_slice %224 {offsets = [0, 0], sizes = [8, 96], strides = [1, 1]} : vector<8x128xf32> to vector<8x96xf32>
    %226 = arith.negf %225 : vector<8x96xf32>
    %227 = math.exp %226 : vector<8x96xf32>
    %cst_82 = arith.constant 1.000000e+00 : f32
    %228 = vector.broadcast %cst_82 : f32 to vector<8x96xf32>
    %229 = arith.addf %228, %227 : vector<8x96xf32>
    %230 = arith.divf %228, %229 : vector<8x96xf32>
    %231 = vector.extract_strided_slice %224 {offsets = [0, 96], sizes = [8, 32], strides = [1, 1]} : vector<8x128xf32> to vector<8x32xf32>
    %232 = math.tanh %231 : vector<8x32xf32>
    %233 = vector.extract_strided_slice %230 {offsets = [0, 0], sizes = [8, 32], strides = [1, 1]} : vector<8x96xf32> to vector<8x32xf32>
    %234 = vector.extract_strided_slice %230 {offsets = [0, 32], sizes = [8, 32], strides = [1, 1]} : vector<8x96xf32> to vector<8x32xf32>
    %235 = vector.extract_strided_slice %230 {offsets = [0, 64], sizes = [8, 32], strides = [1, 1]} : vector<8x96xf32> to vector<8x32xf32>
    %236 = arith.mulf %234, %217 : vector<8x32xf32>
    %237 = arith.mulf %233, %232 : vector<8x32xf32>
    %238 = arith.addf %236, %237 : vector<8x32xf32>
    %239 = math.tanh %238 : vector<8x32xf32>
    %240 = arith.mulf %235, %239 : vector<8x32xf32>
    %c1_i32_83 = arith.constant 1 : i32
    %c8_i32_84 = arith.constant 8 : i32
    %241 = arith.muli %c1_i32_83, %c8_i32_84 : i32
    %242 = tpu.assume_multiple %241, 8 : i32
    %243 = arith.index_cast %242 : i32 to index
    %c0_85 = arith.constant 0 : index
    %244 = vector.load %arg10[%243, %c0_85] : memref<64x128xf32, #tpu.memory_space<vmem>>, vector<8x128xf32>
    %c0_86 = arith.constant 0 : index
    %c0_87 = arith.constant 0 : index
    %245 = vector.load %arg5[%c0_86, %c0_87] : memref<32x128xf32, #tpu.memory_space<vmem>>, vector<32x128xf32>
    %cst_88 = arith.constant dense<0.000000e+00> : vector<8x128xf32>
    %246 = tpu.matmul %240, %245, %cst_88 {dimension_numbers = #tpu.dot_dimension_numbers<[1], [0], [0], [1], [0, 0, 1, 1], [], []>} : vector<8x32xf32>, vector<32x128xf32>, vector<8x128xf32> -> vector<8x128xf32>
    %247 = arith.addf %244, %246 : vector<8x128xf32>
    %248 = vector.extract_strided_slice %247 {offsets = [0, 0], sizes = [8, 96], strides = [1, 1]} : vector<8x128xf32> to vector<8x96xf32>
    %249 = arith.negf %248 : vector<8x96xf32>
    %250 = math.exp %249 : vector<8x96xf32>
    %cst_89 = arith.constant 1.000000e+00 : f32
    %251 = vector.broadcast %cst_89 : f32 to vector<8x96xf32>
    %252 = arith.addf %251, %250 : vector<8x96xf32>
    %253 = arith.divf %251, %252 : vector<8x96xf32>
    %254 = vector.extract_strided_slice %247 {offsets = [0, 96], sizes = [8, 32], strides = [1, 1]} : vector<8x128xf32> to vector<8x32xf32>
    %255 = math.tanh %254 : vector<8x32xf32>
    %256 = vector.extract_strided_slice %253 {offsets = [0, 0], sizes = [8, 32], strides = [1, 1]} : vector<8x96xf32> to vector<8x32xf32>
    %257 = vector.extract_strided_slice %253 {offsets = [0, 32], sizes = [8, 32], strides = [1, 1]} : vector<8x96xf32> to vector<8x32xf32>
    %258 = vector.extract_strided_slice %253 {offsets = [0, 64], sizes = [8, 32], strides = [1, 1]} : vector<8x96xf32> to vector<8x32xf32>
    %259 = arith.mulf %257, %238 : vector<8x32xf32>
    %260 = arith.mulf %256, %255 : vector<8x32xf32>
    %261 = arith.addf %259, %260 : vector<8x32xf32>
    %262 = math.tanh %261 : vector<8x32xf32>
    %263 = arith.mulf %258, %262 : vector<8x32xf32>
    %c2_i32_90 = arith.constant 2 : i32
    %c8_i32_91 = arith.constant 8 : i32
    %264 = arith.muli %c2_i32_90, %c8_i32_91 : i32
    %265 = tpu.assume_multiple %264, 8 : i32
    %266 = arith.index_cast %265 : i32 to index
    %c0_92 = arith.constant 0 : index
    %267 = vector.load %arg10[%266, %c0_92] : memref<64x128xf32, #tpu.memory_space<vmem>>, vector<8x128xf32>
    %c0_93 = arith.constant 0 : index
    %c0_94 = arith.constant 0 : index
    %268 = vector.load %arg5[%c0_93, %c0_94] : memref<32x128xf32, #tpu.memory_space<vmem>>, vector<32x128xf32>
    %cst_95 = arith.constant dense<0.000000e+00> : vector<8x128xf32>
    %269 = tpu.matmul %263, %268, %cst_95 {dimension_numbers = #tpu.dot_dimension_numbers<[1], [0], [0], [1], [0, 0, 1, 1], [], []>} : vector<8x32xf32>, vector<32x128xf32>, vector<8x128xf32> -> vector<8x128xf32>
    %270 = arith.addf %267, %269 : vector<8x128xf32>
    %271 = vector.extract_strided_slice %270 {offsets = [0, 0], sizes = [8, 96], strides = [1, 1]} : vector<8x128xf32> to vector<8x96xf32>
    %272 = arith.negf %271 : vector<8x96xf32>
    %273 = math.exp %272 : vector<8x96xf32>
    %cst_96 = arith.constant 1.000000e+00 : f32
    %274 = vector.broadcast %cst_96 : f32 to vector<8x96xf32>
    %275 = arith.addf %274, %273 : vector<8x96xf32>
    %276 = arith.divf %274, %275 : vector<8x96xf32>
    %277 = vector.extract_strided_slice %270 {offsets = [0, 96], sizes = [8, 32], strides = [1, 1]} : vector<8x128xf32> to vector<8x32xf32>
    %278 = math.tanh %277 : vector<8x32xf32>
    %279 = vector.extract_strided_slice %276 {offsets = [0, 0], sizes = [8, 32], strides = [1, 1]} : vector<8x96xf32> to vector<8x32xf32>
    %280 = vector.extract_strided_slice %276 {offsets = [0, 32], sizes = [8, 32], strides = [1, 1]} : vector<8x96xf32> to vector<8x32xf32>
    %281 = vector.extract_strided_slice %276 {offsets = [0, 64], sizes = [8, 32], strides = [1, 1]} : vector<8x96xf32> to vector<8x32xf32>
    %282 = arith.mulf %280, %261 : vector<8x32xf32>
    %283 = arith.mulf %279, %278 : vector<8x32xf32>
    %284 = arith.addf %282, %283 : vector<8x32xf32>
    %285 = math.tanh %284 : vector<8x32xf32>
    %286 = arith.mulf %281, %285 : vector<8x32xf32>
    %c3_i32_97 = arith.constant 3 : i32
    %c8_i32_98 = arith.constant 8 : i32
    %287 = arith.muli %c3_i32_97, %c8_i32_98 : i32
    %288 = tpu.assume_multiple %287, 8 : i32
    %289 = arith.index_cast %288 : i32 to index
    %c0_99 = arith.constant 0 : index
    %290 = vector.load %arg10[%289, %c0_99] : memref<64x128xf32, #tpu.memory_space<vmem>>, vector<8x128xf32>
    %c0_100 = arith.constant 0 : index
    %c0_101 = arith.constant 0 : index
    %291 = vector.load %arg5[%c0_100, %c0_101] : memref<32x128xf32, #tpu.memory_space<vmem>>, vector<32x128xf32>
    %cst_102 = arith.constant dense<0.000000e+00> : vector<8x128xf32>
    %292 = tpu.matmul %286, %291, %cst_102 {dimension_numbers = #tpu.dot_dimension_numbers<[1], [0], [0], [1], [0, 0, 1, 1], [], []>} : vector<8x32xf32>, vector<32x128xf32>, vector<8x128xf32> -> vector<8x128xf32>
    %293 = arith.addf %290, %292 : vector<8x128xf32>
    %294 = vector.extract_strided_slice %293 {offsets = [0, 0], sizes = [8, 96], strides = [1, 1]} : vector<8x128xf32> to vector<8x96xf32>
    %295 = arith.negf %294 : vector<8x96xf32>
    %296 = math.exp %295 : vector<8x96xf32>
    %cst_103 = arith.constant 1.000000e+00 : f32
    %297 = vector.broadcast %cst_103 : f32 to vector<8x96xf32>
    %298 = arith.addf %297, %296 : vector<8x96xf32>
    %299 = arith.divf %297, %298 : vector<8x96xf32>
    %300 = vector.extract_strided_slice %293 {offsets = [0, 96], sizes = [8, 32], strides = [1, 1]} : vector<8x128xf32> to vector<8x32xf32>
    %301 = math.tanh %300 : vector<8x32xf32>
    %302 = vector.extract_strided_slice %299 {offsets = [0, 0], sizes = [8, 32], strides = [1, 1]} : vector<8x96xf32> to vector<8x32xf32>
    %303 = vector.extract_strided_slice %299 {offsets = [0, 32], sizes = [8, 32], strides = [1, 1]} : vector<8x96xf32> to vector<8x32xf32>
    %304 = vector.extract_strided_slice %299 {offsets = [0, 64], sizes = [8, 32], strides = [1, 1]} : vector<8x96xf32> to vector<8x32xf32>
    %305 = arith.mulf %303, %284 : vector<8x32xf32>
    %306 = arith.mulf %302, %301 : vector<8x32xf32>
    %307 = arith.addf %305, %306 : vector<8x32xf32>
    %308 = math.tanh %307 : vector<8x32xf32>
    %309 = arith.mulf %304, %308 : vector<8x32xf32>
    %c4_i32_104 = arith.constant 4 : i32
    %c8_i32_105 = arith.constant 8 : i32
    %310 = arith.muli %c4_i32_104, %c8_i32_105 : i32
    %311 = tpu.assume_multiple %310, 8 : i32
    %312 = arith.index_cast %311 : i32 to index
    %c0_106 = arith.constant 0 : index
    %313 = vector.load %arg10[%312, %c0_106] : memref<64x128xf32, #tpu.memory_space<vmem>>, vector<8x128xf32>
    %c0_107 = arith.constant 0 : index
    %c0_108 = arith.constant 0 : index
    %314 = vector.load %arg5[%c0_107, %c0_108] : memref<32x128xf32, #tpu.memory_space<vmem>>, vector<32x128xf32>
    %cst_109 = arith.constant dense<0.000000e+00> : vector<8x128xf32>
    %315 = tpu.matmul %309, %314, %cst_109 {dimension_numbers = #tpu.dot_dimension_numbers<[1], [0], [0], [1], [0, 0, 1, 1], [], []>} : vector<8x32xf32>, vector<32x128xf32>, vector<8x128xf32> -> vector<8x128xf32>
    %316 = arith.addf %313, %315 : vector<8x128xf32>
    %317 = vector.extract_strided_slice %316 {offsets = [0, 0], sizes = [8, 96], strides = [1, 1]} : vector<8x128xf32> to vector<8x96xf32>
    %318 = arith.negf %317 : vector<8x96xf32>
    %319 = math.exp %318 : vector<8x96xf32>
    %cst_110 = arith.constant 1.000000e+00 : f32
    %320 = vector.broadcast %cst_110 : f32 to vector<8x96xf32>
    %321 = arith.addf %320, %319 : vector<8x96xf32>
    %322 = arith.divf %320, %321 : vector<8x96xf32>
    %323 = vector.extract_strided_slice %316 {offsets = [0, 96], sizes = [8, 32], strides = [1, 1]} : vector<8x128xf32> to vector<8x32xf32>
    %324 = math.tanh %323 : vector<8x32xf32>
    %325 = vector.extract_strided_slice %322 {offsets = [0, 0], sizes = [8, 32], strides = [1, 1]} : vector<8x96xf32> to vector<8x32xf32>
    %326 = vector.extract_strided_slice %322 {offsets = [0, 32], sizes = [8, 32], strides = [1, 1]} : vector<8x96xf32> to vector<8x32xf32>
    %327 = vector.extract_strided_slice %322 {offsets = [0, 64], sizes = [8, 32], strides = [1, 1]} : vector<8x96xf32> to vector<8x32xf32>
    %328 = arith.mulf %326, %307 : vector<8x32xf32>
    %329 = arith.mulf %325, %324 : vector<8x32xf32>
    %330 = arith.addf %328, %329 : vector<8x32xf32>
    %331 = math.tanh %330 : vector<8x32xf32>
    %332 = arith.mulf %327, %331 : vector<8x32xf32>
    %c5_i32_111 = arith.constant 5 : i32
    %c8_i32_112 = arith.constant 8 : i32
    %333 = arith.muli %c5_i32_111, %c8_i32_112 : i32
    %334 = tpu.assume_multiple %333, 8 : i32
    %335 = arith.index_cast %334 : i32 to index
    %c0_113 = arith.constant 0 : index
    %336 = vector.load %arg10[%335, %c0_113] : memref<64x128xf32, #tpu.memory_space<vmem>>, vector<8x128xf32>
    %c0_114 = arith.constant 0 : index
    %c0_115 = arith.constant 0 : index
    %337 = vector.load %arg5[%c0_114, %c0_115] : memref<32x128xf32, #tpu.memory_space<vmem>>, vector<32x128xf32>
    %cst_116 = arith.constant dense<0.000000e+00> : vector<8x128xf32>
    %338 = tpu.matmul %332, %337, %cst_116 {dimension_numbers = #tpu.dot_dimension_numbers<[1], [0], [0], [1], [0, 0, 1, 1], [], []>} : vector<8x32xf32>, vector<32x128xf32>, vector<8x128xf32> -> vector<8x128xf32>
    %339 = arith.addf %336, %338 : vector<8x128xf32>
    %340 = vector.extract_strided_slice %339 {offsets = [0, 0], sizes = [8, 96], strides = [1, 1]} : vector<8x128xf32> to vector<8x96xf32>
    %341 = arith.negf %340 : vector<8x96xf32>
    %342 = math.exp %341 : vector<8x96xf32>
    %cst_117 = arith.constant 1.000000e+00 : f32
    %343 = vector.broadcast %cst_117 : f32 to vector<8x96xf32>
    %344 = arith.addf %343, %342 : vector<8x96xf32>
    %345 = arith.divf %343, %344 : vector<8x96xf32>
    %346 = vector.extract_strided_slice %339 {offsets = [0, 96], sizes = [8, 32], strides = [1, 1]} : vector<8x128xf32> to vector<8x32xf32>
    %347 = math.tanh %346 : vector<8x32xf32>
    %348 = vector.extract_strided_slice %345 {offsets = [0, 0], sizes = [8, 32], strides = [1, 1]} : vector<8x96xf32> to vector<8x32xf32>
    %349 = vector.extract_strided_slice %345 {offsets = [0, 32], sizes = [8, 32], strides = [1, 1]} : vector<8x96xf32> to vector<8x32xf32>
    %350 = vector.extract_strided_slice %345 {offsets = [0, 64], sizes = [8, 32], strides = [1, 1]} : vector<8x96xf32> to vector<8x32xf32>
    %351 = arith.mulf %349, %330 : vector<8x32xf32>
    %352 = arith.mulf %348, %347 : vector<8x32xf32>
    %353 = arith.addf %351, %352 : vector<8x32xf32>
    %354 = math.tanh %353 : vector<8x32xf32>
    %355 = arith.mulf %350, %354 : vector<8x32xf32>
    %c6_i32_118 = arith.constant 6 : i32
    %c8_i32_119 = arith.constant 8 : i32
    %356 = arith.muli %c6_i32_118, %c8_i32_119 : i32
    %357 = tpu.assume_multiple %356, 8 : i32
    %358 = arith.index_cast %357 : i32 to index
    %c0_120 = arith.constant 0 : index
    %359 = vector.load %arg10[%358, %c0_120] : memref<64x128xf32, #tpu.memory_space<vmem>>, vector<8x128xf32>
    %c0_121 = arith.constant 0 : index
    %c0_122 = arith.constant 0 : index
    %360 = vector.load %arg5[%c0_121, %c0_122] : memref<32x128xf32, #tpu.memory_space<vmem>>, vector<32x128xf32>
    %cst_123 = arith.constant dense<0.000000e+00> : vector<8x128xf32>
    %361 = tpu.matmul %355, %360, %cst_123 {dimension_numbers = #tpu.dot_dimension_numbers<[1], [0], [0], [1], [0, 0, 1, 1], [], []>} : vector<8x32xf32>, vector<32x128xf32>, vector<8x128xf32> -> vector<8x128xf32>
    %362 = arith.addf %359, %361 : vector<8x128xf32>
    %363 = vector.extract_strided_slice %362 {offsets = [0, 0], sizes = [8, 96], strides = [1, 1]} : vector<8x128xf32> to vector<8x96xf32>
    %364 = arith.negf %363 : vector<8x96xf32>
    %365 = math.exp %364 : vector<8x96xf32>
    %cst_124 = arith.constant 1.000000e+00 : f32
    %366 = vector.broadcast %cst_124 : f32 to vector<8x96xf32>
    %367 = arith.addf %366, %365 : vector<8x96xf32>
    %368 = arith.divf %366, %367 : vector<8x96xf32>
    %369 = vector.extract_strided_slice %362 {offsets = [0, 96], sizes = [8, 32], strides = [1, 1]} : vector<8x128xf32> to vector<8x32xf32>
    %370 = math.tanh %369 : vector<8x32xf32>
    %371 = vector.extract_strided_slice %368 {offsets = [0, 0], sizes = [8, 32], strides = [1, 1]} : vector<8x96xf32> to vector<8x32xf32>
    %372 = vector.extract_strided_slice %368 {offsets = [0, 32], sizes = [8, 32], strides = [1, 1]} : vector<8x96xf32> to vector<8x32xf32>
    %373 = vector.extract_strided_slice %368 {offsets = [0, 64], sizes = [8, 32], strides = [1, 1]} : vector<8x96xf32> to vector<8x32xf32>
    %374 = arith.mulf %372, %353 : vector<8x32xf32>
    %375 = arith.mulf %371, %370 : vector<8x32xf32>
    %376 = arith.addf %374, %375 : vector<8x32xf32>
    %377 = math.tanh %376 : vector<8x32xf32>
    %378 = arith.mulf %373, %377 : vector<8x32xf32>
    %c7_i32_125 = arith.constant 7 : i32
    %c8_i32_126 = arith.constant 8 : i32
    %379 = arith.muli %c7_i32_125, %c8_i32_126 : i32
    %380 = tpu.assume_multiple %379, 8 : i32
    %381 = arith.index_cast %380 : i32 to index
    %c0_127 = arith.constant 0 : index
    %382 = vector.load %arg10[%381, %c0_127] : memref<64x128xf32, #tpu.memory_space<vmem>>, vector<8x128xf32>
    %c0_128 = arith.constant 0 : index
    %c0_129 = arith.constant 0 : index
    %383 = vector.load %arg5[%c0_128, %c0_129] : memref<32x128xf32, #tpu.memory_space<vmem>>, vector<32x128xf32>
    %cst_130 = arith.constant dense<0.000000e+00> : vector<8x128xf32>
    %384 = tpu.matmul %378, %383, %cst_130 {dimension_numbers = #tpu.dot_dimension_numbers<[1], [0], [0], [1], [0, 0, 1, 1], [], []>} : vector<8x32xf32>, vector<32x128xf32>, vector<8x128xf32> -> vector<8x128xf32>
    %385 = arith.addf %382, %384 : vector<8x128xf32>
    %386 = vector.extract_strided_slice %385 {offsets = [0, 0], sizes = [8, 96], strides = [1, 1]} : vector<8x128xf32> to vector<8x96xf32>
    %387 = arith.negf %386 : vector<8x96xf32>
    %388 = math.exp %387 : vector<8x96xf32>
    %cst_131 = arith.constant 1.000000e+00 : f32
    %389 = vector.broadcast %cst_131 : f32 to vector<8x96xf32>
    %390 = arith.addf %389, %388 : vector<8x96xf32>
    %391 = arith.divf %389, %390 : vector<8x96xf32>
    %392 = vector.extract_strided_slice %385 {offsets = [0, 96], sizes = [8, 32], strides = [1, 1]} : vector<8x128xf32> to vector<8x32xf32>
    %393 = math.tanh %392 : vector<8x32xf32>
    %394 = vector.extract_strided_slice %391 {offsets = [0, 0], sizes = [8, 32], strides = [1, 1]} : vector<8x96xf32> to vector<8x32xf32>
    %395 = vector.extract_strided_slice %391 {offsets = [0, 32], sizes = [8, 32], strides = [1, 1]} : vector<8x96xf32> to vector<8x32xf32>
    %396 = vector.extract_strided_slice %391 {offsets = [0, 64], sizes = [8, 32], strides = [1, 1]} : vector<8x96xf32> to vector<8x32xf32>
    %397 = arith.mulf %395, %376 : vector<8x32xf32>
    %398 = arith.mulf %394, %393 : vector<8x32xf32>
    %399 = arith.addf %397, %398 : vector<8x32xf32>
    %400 = math.tanh %399 : vector<8x32xf32>
    %401 = arith.mulf %396, %400 : vector<8x32xf32>
    %c8_i32_132 = arith.constant 8 : i32
    %c0_133 = arith.constant 0 : index
    %c0_134 = arith.constant 0 : index
    %402 = vector.load %arg7[%c0_133, %c0_134] : memref<32x2xf32, #tpu.memory_space<vmem>>, vector<32x2xf32>
    %cst_135 = arith.constant dense<0.000000e+00> : vector<8x2xf32>
    %403 = tpu.matmul %401, %402, %cst_135 {dimension_numbers = #tpu.dot_dimension_numbers<[1], [0], [0], [1], [0, 0, 1, 1], [], []>} : vector<8x32xf32>, vector<32x2xf32>, vector<8x2xf32> -> vector<8x2xf32>
    %c0_136 = arith.constant 0 : index
    %c0_137 = arith.constant 0 : index
    %404 = vector.load %arg8[%c0_136, %c0_137] : memref<1x2xf32, #tpu.memory_space<vmem>>, vector<1x2xf32>
    %405 = vector.broadcast %404 : vector<1x2xf32> to vector<8x2xf32>
    %406 = arith.addf %403, %405 : vector<8x2xf32>
    %c0_138 = arith.constant 0 : index
    %c0_139 = arith.constant 0 : index
    %407 = vector.load %arg9[%c0_138, %c0_139] : memref<8x2xf32, #tpu.memory_space<vmem>>, vector<8x2xf32>
    tpu.vector_store %arg9[%c0_138, %c0_139], %406 {strides = array<i32>} : memref<8x2xf32, #tpu.memory_space<vmem>>, vector<8x2xf32>,
    return
  }
}

</mosaic_0001>

<bundles_post_ra>
// kernel: tpu_custom_call.1
= control target key start
LH: loop header
LB: loop body
LE: loop exit
PB: predicated region body
PF: predicated region fallthrough
CT: control target
= control target key end

     0   :  { %14 = vsyncpa [#allocation5], 0  ;;  %s1563_s12 = smov [#allocation4]   ;;  %s1564_s14 = smov 128   ;;  %s1934_s0 = inlined_call_operand.vmem [shape: f32[64,16], index: 0, kind: input, shape index: {}]   ;;  %s1935_s1 = inlined_call_operand.hbm [shape: f32[16,128], index: 1, kind: input, shape index: {}]   ;;  %s1936_s2 = inlined_call_operand.vmem [shape: f32[32,128], index: 2, kind: input, shape index: {}]   ;;  %s1937_s3 = inlined_call_operand.vmem [shape: f32[1,128], index: 3, kind: input, shape index: {}]   ;;  %s1938_s4 = inlined_call_operand.vmem [shape: f32[32,128], index: 4, kind: input, shape index: {}]   ;;  %s1939_s5 = inlined_call_operand.vmem [shape: f32[32,128], index: 5, kind: input, shape index: {}]   ;;  %s1940_s6 = inlined_call_operand.vmem [shape: f32[1,128], index: 6, kind: input, shape index: {}]   ;;  %s1941_s7 = inlined_call_operand.vmem [shape: f32[32,2], index: 7, kind: input, shape index: {}]   ;;  %s1942_s8 = inlined_call_operand.vmem [shape: f32[1,2], index: 8, kind: input, shape index: {}]   ;;  %s1943_s9 = inlined_call_operand.vmem [shape: f32[8,2], index: 9, kind: output, shape index: {}]  }
   0x1   :  { %s21_s11 = sshll.u32 %s1935_s1, 4  ;;  %s23_s13 = sshll.u32 %s1563_s12, 4  ;;  %s22_s11 = int_to_ptr.hbm [resolvable:$true] %s21_s11  ;;  %s24_s13 = int_to_ptr.vmem [resolvable:$true] %s23_s13 }
   0x2   :  { %s1565_s15 = smov 8  }
   0x3   :  { %29 = dma.hbm_to_vmem [thread:$0]  %s22_s11, 256, %s24_s13, [#allocation5], %s1564_s14, %s1564_s14, %s1565_s15  }
   0x4   :  { %1561 = dma.done.wait [#allocation5], 256  }
   0x5   :  { %1562 = vsyncadd [#allocation5], 4294967040  ;;  %v1625_v0 = vld [vmem:[%s1936_s2 + $0x18] sm:$0xff]  ;;  %v57_v1 = vld [vmem:[#allocation4 + $0x8] sm:$0xff]  ;;  %vm62_vm0 = vcmask 130048   ;;  %v1566_v7 = vmov 0.0  }
   0x6   :  { %v1630_v2 = vld [vmem:[%s1936_s2 + $0x10] sm:$0xff]  ;;  %157 = vmatpush.msra.mxu1 %v1625_v0  ;;  %101 = vmatpush.msra.mxu0 %v57_v1  ;;  %v56_v3 = vld [vmem:[#allocation4] sm:$0xff]  ;;  %v1639_v5 = vld [vmem:[%s1936_s2 + $0x8] sm:$0xff]  ;;  %s1567_s26 = smov 32   ;;  %s1568_s27 = smov 64   ;;  %vm141_vm5 = vcmask 261120  }
   0x7   :  { %v48_v4 = vld [vmem:[%s1934_s0] sm:$0xff]  ;;  %228 = vmatpush.msra.mxu2 %v1625_v0  ;;  %v723_v35 = vld [vmem:[%s1938_s4 + $0x18] sm:$0xff]  ;;  %v722_v36 = vld [vmem:[%s1938_s4 + $0x10] sm:$0xff] }
   0x8   :  { %158 = vmatpush.msra.mxu1 %v1630_v2  ;;  %102 = vmatpush.msra.mxu0 %v56_v3  ;;  %v1647_v6 = vld [vmem:[%s1936_s2] sm:$0xff]  ;;  %v49_v37 = vld [vmem:[%s1934_s0 + $0x8] sm:$0xff] }
   0x9   :  { %1352 = vmatmul.msk.f32.vlgmr.msra.gmra.mxu0 %vm62_vm0, %v48_v4  ;;  %229 = vmatpush.msra.mxu2 %v1630_v2  ;;  %v1674_v8 = vld [vmem:[%s1937_s3] ss:$0 sm:$0xff]  ;;  %v721_v38 = vld [vmem:[%s1938_s4 + $0x8] sm:$0xff] }
   0xa   :  { %159 = vmatpush.msra.mxu1 %v1639_v5  ;;  %516 = vmatpush.msrb.mxu0 %v1625_v0  ;;  %v720_v39 = vld [vmem:[%s1938_s4] sm:$0xff] }
   0xb   :  { %230 = vmatpush.msra.mxu2 %v1639_v5  ;;  %764 = vmatpush.msra.mxu3 %v723_v35 }
   0xc   :  { %160 = vmatpush.msra.mxu1 %v1647_v6  ;;  %517 = vmatpush.msrb.mxu0 %v1630_v2 }
   0xd   :  { %161 = vmatmul.f32.vlgmr.msra.gmra.mxu1 %v1566_v7  ;;  %231 = vmatpush.msra.mxu2 %v1647_v6 }
   0xe   :  { %372 = vmatpush.msrb.mxu1 %v1625_v0  ;;  %518 = vmatpush.msrb.mxu0 %v1639_v5 }
   0xf   :  { %300 = vmatpush.msrb.mxu2 %v1625_v0  ;;  %765 = vmatpush.msra.mxu3 %v722_v36 }
  0x10   :  { %373 = vmatpush.msrb.mxu1 %v1630_v2  ;;  %519 = vmatpush.msrb.mxu0 %v1647_v6 }
  0x11   :  { %301 = vmatpush.msrb.mxu2 %v1630_v2  ;;  %1353 = vmatmul.msk.f32.gmra.mxu0 %vm62_vm0, %v49_v37 }
  0x12   :  { %374 = vmatpush.msrb.mxu1 %v1639_v5  ;;  %766 = vmatpush.msra.mxu3 %v721_v38 }
  0x13   :  { %302 = vmatpush.msrb.mxu2 %v1639_v5 }
  0x14   :  { %375 = vmatpush.msrb.mxu1 %v1647_v6  ;;  %767 = vmatpush.msra.mxu3 %v720_v39 }
  0x15   :  { %303 = vmatpush.msrb.mxu2 %v1647_v6 }
  0x16   :  { %588 = vmatpush.msra.mxu1 %v1625_v0 }
  0x18   :  { %589 = vmatpush.msra.mxu1 %v1630_v2 }
  0x1a   :  { %590 = vmatpush.msra.mxu1 %v1639_v5 }
  0x1c   :  { %591 = vmatpush.msra.mxu1 %v1647_v6 }
  0x86   :  { %v104_v9 = vpop.f32.mrf.mxu0 }
  0x87   :  { %v105_v10 = vadd.f32 %v1674_v8, %v104_v9 }
  0x8a   :  { %v162_v11 = vpop.f32.mrf.mxu1 }
  0x8b   :  { %v165_v12 = vadd.f32 %v162_v11, %v105_v10  ;;  %v50_v10 = vld [vmem:[%s1934_s0 + $0x10] sm:$0xff] }
  0x8c   :  { %1354 = vmatmul.msk.f32.gmra.mxu0 %vm62_vm0, %v50_v10 }
  0x8d   :  { %1408 = vtanh.f32 %v165_v12  ;;  %v1360_v14 = vmul.f32 -1.442695, %v165_v12 }
  0x8e   :  { %v107_v42 = vpop.f32.mrf.mxu0 }
  0x8f   :  { %1410 = vpow2.f32 %v1360_v14  ;;  %v108_v43 = vadd.f32 %v1674_v8, %v107_v42 }
  0x93   :  { %v1409_v13 = vpop.eup %1408 }
  0x94   :  { %188 = vrot.lane.b32.xlu0 %v1409_v13, %s1567_s26 }
  0x95   :  { %v1411_v15 = vpop.eup %1410 }
  0x96   :  { %v169_v16 = vadd.f32 1.0, %v1411_v15 }
  0x98   :  { %1412 = vrcp.f32 %v169_v16  ;;  %v181_v22 = vand.u32 2147483648, %v169_v16  ;;  %vm175_vm2 = vweird.f32 %v169_v16  ;;  %v179_v23 = vand.u32 2147483647, %v169_v16 }
  0x9a   :  { %v182_v25 = vor.u32 1.1754944e-38, %v181_v22  ;;  %vm180_vm4 = vcmp.eq.f32.partialorder %v179_v23, 8.507059e+37 }
  0x9e   :  { %v1413_v17 = vpop.eup %1412 }
  0x9f   :  { %v171_v18 = vmul.f32 %v1413_v17, %v169_v16  ;;  %vm176_vm1 = vweird.f32 %v1413_v17 }
  0xa0   :  { %vm177_vm3 = vmor %vm175_vm2, %vm176_vm1 }
  0xa1   :  { %v172_v19 = vsub.f32 1.0, %v171_v18 }
  0xa3   :  { %v173_v20 = vmul.f32 %v1413_v17, %v172_v19 }
  0xa5   :  { %v174_v21 = vadd.f32 %v1413_v17, %v173_v20 }
  0xa7   :  { %v178_v24 = vsel %vm177_vm3, %v1413_v17, %v174_v21 }
  0xa8   :  { %v183_v27 = vsel %vm180_vm4, %v182_v25, %v178_v24 }
  0xa9   :  { %v186_v29 = vmul.f32 0.0, %v183_v27 }
 0x106   :  { %v189_v26 = vpop.permute.xlu0 %188 }
 0x107   :  { %v191_v28 = vmul.f32 %v189_v26, %v183_v27 }
 0x109   :  { %193 = vrot.lane.b32.xlu0 %v191_v28, %s1567_s26  ;;  %v110_v13 = vpop.f32.mrf.mxu0 }
 0x10a   :  { %v111_v14 = vadd.f32 %v1674_v8, %v110_v13 }
 0x17b   :  { %v194_v30 = vpop.permute.xlu0 %193 }
 0x17c   :  { %v196_v31 = vadd.f32 %v194_v30, %v186_v29 }
 0x17e   :  { %1414 = vtanh.f32 %v196_v31 }
 0x184   :  { %v1415_v32 = vpop.eup %1414 }
 0x185   :  { %199 = vrot.lane.b32.xlu1 %v1415_v32, %s1567_s26 }
 0x1f7   :  { %v200_v33 = vpop.permute.xlu1 %199 }
 0x1f8   :  { %v202_v34 = vmul.f32 %v200_v33, %v183_v27  ;;  %v51_v33 = vld [vmem:[%s1934_s0 + $0x18] sm:$0xff] }
 0x1f9   :  { %1355 = vmatmul.msk.f32.gmra.mxu0 %vm62_vm0, %v51_v33 }
 0x1fa   :  { %204 = vrot.lane.b32.xlu1 %v202_v34, %s1568_s27 }
 0x26c   :  { %v205_v40 = vpop.permute.xlu1 %204 }
 0x26d   :  { %207 = vst.msk [vmem:[#allocation3] sm:$0xff] %vm141_vm5, %v205_v40  ;;  %1361 = vmatmul.msk.f32.vlgmr.msra.gmra.mxu2 %vm141_vm5, %v205_v40 }
 0x26e   :  { %444 = vmatpush.msra.mxu2 %v1625_v0 }
 0x270   :  { %445 = vmatpush.msra.mxu2 %v1630_v2 }
 0x272   :  { %446 = vmatpush.msra.mxu2 %v1639_v5 }
 0x274   :  { %v712_v41 = vld [vmem:[#allocation3] sm:$0xff]  ;;  %447 = vmatpush.msra.mxu2 %v1647_v6 }
 0x275   :  { %1375 = vmatmul.msk.f32.vlgmr.msra.gmra.mxu3 %vm141_vm5, %v712_v41 }
 0x276   :  { %v113_v38 = vpop.f32.mrf.mxu0 }
 0x277   :  { %v114_v39 = vadd.f32 %v1674_v8, %v113_v38 }
 0x2f0   :  { %v233_v44 = vpop.f32.mrf.mxu2 }
 0x2f1   :  { %v236_v45 = vadd.f32 %v233_v44, %v108_v43 }
 0x2f3   :  { %1416 = vtanh.f32 %v236_v45  ;;  %v1362_v47 = vmul.f32 -1.442695, %v236_v45 }
 0x2f5   :  { %1418 = vpow2.f32 %v1362_v47 }
 0x2f9   :  { %v1417_v46 = vpop.eup %1416 }
 0x2fa   :  { %259 = vrot.lane.b32.xlu2 %v1417_v46, %s1567_s26 }
 0x2fb   :  { %v1419_v48 = vpop.eup %1418 }
 0x2fc   :  { %v240_v49 = vadd.f32 1.0, %v1419_v48 }
 0x2fe   :  { %1420 = vrcp.f32 %v240_v49  ;;  %v252_v55 = vand.u32 2147483648, %v240_v49  ;;  %vm246_vm7 = vweird.f32 %v240_v49  ;;  %v250_v56 = vand.u32 2147483647, %v240_v49 }
 0x300   :  { %v253_v58 = vor.u32 1.1754944e-38, %v252_v55  ;;  %vm251_vm9 = vcmp.eq.f32.partialorder %v250_v56, 8.507059e+37 }
 0x304   :  { %v1421_v50 = vpop.eup %1420 }
 0x305   :  { %v242_v51 = vmul.f32 %v1421_v50, %v240_v49  ;;  %vm247_vm6 = vweird.f32 %v1421_v50 }
 0x306   :  { %vm248_vm8 = vmor %vm246_vm7, %vm247_vm6 }
 0x307   :  { %v243_v52 = vsub.f32 1.0, %v242_v51 }
 0x309   :  { %v244_v53 = vmul.f32 %v1421_v50, %v243_v52 }
 0x30b   :  { %v245_v54 = vadd.f32 %v1421_v50, %v244_v53 }
 0x30d   :  { %v249_v57 = vsel %vm248_vm8, %v1421_v50, %v245_v54 }
 0x30e   :  { %v254_v60 = vsel %vm251_vm9, %v253_v58, %v249_v57 }
 0x30f   :  { %v257_v62 = vmul.f32 %v254_v60, %v196_v31 }
 0x354   :  { %v260_v59 = vpop.permute.xlu2 %259 }
 0x355   :  { %v262_v61 = vmul.f32 %v260_v59, %v254_v60 }
 0x357   :  { %264 = vrot.lane.b32.xlu2 %v262_v61, %s1567_s26 }
 0x3b1   :  { %v265_v63 = vpop.permute.xlu2 %264 }
 0x3b2   :  { %v267_v1 = vadd.f32 %v265_v63, %v257_v62 }
 0x3b4   :  { %1422 = vtanh.f32 %v267_v1 }
 0x3ba   :  { %v1423_v3 = vpop.eup %1422 }
 0x3bb   :  { %270 = vrot.lane.b32.xlu0 %v1423_v3, %s1567_s26 }
 0x42d   :  { %v271_v4 = vpop.permute.xlu0 %270 }
 0x42e   :  { %v273_v9 = vmul.f32 %v271_v4, %v254_v60 }
 0x430   :  { %275 = vrot.lane.b32.xlu1 %v273_v9, %s1568_s27 }
 0x4a2   :  { %v276_v11 = vpop.permute.xlu1 %275 }
 0x4a3   :  { %279 = vst.msk [vmem:[#allocation3 + $0x8] sm:$0xff] %vm141_vm5, %v276_v11  ;;  %1363 = vmatmul.msk.f32.vlgmr.msrb.gmra.mxu2 %vm141_vm5, %v276_v11 }
 0x4a4   :  { %660 = vmatpush.msrb.mxu2 %v1625_v0 }
 0x4a6   :  { %661 = vmatpush.msrb.mxu2 %v1630_v2 }
 0x4a8   :  { %662 = vmatpush.msrb.mxu2 %v1639_v5 }
 0x4aa   :  { %v713_v12 = vld [vmem:[#allocation3 + $0x8] sm:$0xff]  ;;  %663 = vmatpush.msrb.mxu2 %v1647_v6 }
 0x4ab   :  { %1376 = vmatmul.msk.f32.gmra.mxu3 %vm141_vm5, %v713_v12 }
 0x526   :  { %v305_v15 = vpop.f32.mrf.mxu2 }
 0x527   :  { %v308_v16 = vadd.f32 %v305_v15, %v111_v14 }
 0x529   :  { %1424 = vtanh.f32 %v308_v16  ;;  %v1364_v18 = vmul.f32 -1.442695, %v308_v16 }
 0x52b   :  { %1426 = vpow2.f32 %v1364_v18 }
 0x52f   :  { %v1425_v17 = vpop.eup %1424 }
 0x530   :  { %331 = vrot.lane.b32.xlu2 %v1425_v17, %s1567_s26 }
 0x531   :  { %v1427_v0 = vpop.eup %1426 }
 0x532   :  { %v312_v2 = vadd.f32 1.0, %v1427_v0 }
 0x534   :  { %1428 = vrcp.f32 %v312_v2  ;;  %v324_v22 = vand.u32 2147483648, %v312_v2  ;;  %vm318_vm11 = vweird.f32 %v312_v2  ;;  %v322_v23 = vand.u32 2147483647, %v312_v2 }
 0x536   :  { %v325_v25 = vor.u32 1.1754944e-38, %v324_v22  ;;  %vm323_vm13 = vcmp.eq.f32.partialorder %v322_v23, 8.507059e+37 }
 0x53a   :  { %v1429_v5 = vpop.eup %1428 }
 0x53b   :  { %v314_v19 = vmul.f32 %v1429_v5, %v312_v2  ;;  %vm319_vm10 = vweird.f32 %v1429_v5 }
 0x53c   :  { %vm320_vm12 = vmor %vm318_vm11, %vm319_vm10 }
 0x53d   :  { %v315_v20 = vsub.f32 1.0, %v314_v19 }
 0x53f   :  { %v316_v6 = vmul.f32 %v1429_v5, %v315_v20 }
 0x541   :  { %v317_v21 = vadd.f32 %v1429_v5, %v316_v6 }
 0x543   :  { %v321_v24 = vsel %vm320_vm12, %v1429_v5, %v317_v21 }
 0x544   :  { %v326_v27 = vsel %vm323_vm13, %v325_v25, %v321_v24 }
 0x545   :  { %v329_v29 = vmul.f32 %v326_v27, %v267_v1  ;;  %v52_v1 = vld [vmem:[%s1934_s0 + $0x20] sm:$0xff] }
 0x546   :  { %1356 = vmatmul.msk.f32.gmra.mxu0 %vm62_vm0, %v52_v1  ;;  %v1779_v1 = vld [vmem:[%s1939_s5 + $0x18] sm:$0xff] }
 0x58a   :  { %v332_v26 = vpop.permute.xlu2 %331 }
 0x58b   :  { %v334_v28 = vmul.f32 %v332_v26, %v326_v27 }
 0x58d   :  { %336 = vrot.lane.b32.xlu0 %v334_v28, %s1567_s26 }
 0x5c3   :  { %v116_v9 = vpop.f32.mrf.mxu0 }
 0x5c4   :  { %v117_v10 = vadd.f32 %v1674_v8, %v116_v9  ;;  %v1798_v9 = vld [vmem:[%s1939_s5] sm:$0xff] }
 0x5ff   :  { %v337_v30 = vpop.permute.xlu0 %336 }
 0x600   :  { %v339_v31 = vadd.f32 %v337_v30, %v329_v29  ;;  %v53_v29 = vld [vmem:[%s1934_s0 + $0x28] sm:$0xff]  ;;  %v54_v30 = vld [vmem:[%s1934_s0 + $0x30] sm:$0xff] }
 0x601   :  { %1357 = vmatmul.msk.f32.gmra.mxu0 %vm62_vm0, %v53_v29 }
 0x602   :  { %1430 = vtanh.f32 %v339_v31 }
 0x608   :  { %v1431_v32 = vpop.eup %1430 }
 0x609   :  { %342 = vrot.lane.b32.xlu1 %v1431_v32, %s1567_s26  ;;  %1358 = vmatmul.msk.f32.gmra.mxu0 %vm62_vm0, %v54_v30 }
 0x67b   :  { %v343_v34 = vpop.permute.xlu1 %342 }
 0x67c   :  { %v345_v35 = vmul.f32 %v343_v34, %v326_v27 }
 0x67e   :  { %347 = vrot.lane.b32.xlu2 %v345_v35, %s1568_s27 }
 0x6d8   :  { %v348_v36 = vpop.permute.xlu2 %347 }
 0x6d9   :  { %351 = vst.msk [vmem:[#allocation3 + $0x10] sm:$0xff] %vm141_vm5, %v348_v36  ;;  %1365 = vmatmul.msk.f32.vlgmr.msrb.gmra.mxu1 %vm141_vm5, %v348_v36  ;;  %v119_v36 = vpop.f32.mrf.mxu0 }
 0x6da   :  { %818 = vmatpush.msrb.mxu1 %v1779_v1 }
 0x6e0   :  { %v714_v37 = vld [vmem:[#allocation3 + $0x10] sm:$0xff] }
 0x6e1   :  { %1377 = vmatmul.msk.f32.gmra.mxu3 %vm141_vm5, %v714_v37  ;;  %v1764_v37 = vpop.f32.mrf.mxu0 }
 0x756   :  { %v377_v40 = vpop.f32.mrf.mxu1 }
 0x757   :  { %v380_v41 = vadd.f32 %v377_v40, %v114_v39  ;;  %v120_v39 = vadd.f32 %v1674_v8, %v119_v36 }
 0x759   :  { %1432 = vtanh.f32 %v380_v41  ;;  %v1366_v43 = vmul.f32 -1.442695, %v380_v41 }
 0x75b   :  { %1434 = vpow2.f32 %v1366_v43 }
 0x75f   :  { %v1433_v42 = vpop.eup %1432 }
 0x760   :  { %403 = vrot.lane.b32.xlu0 %v1433_v42, %s1567_s26 }
 0x761   :  { %v1435_v44 = vpop.eup %1434 }
 0x762   :  { %v384_v45 = vadd.f32 1.0, %v1435_v44 }
 0x764   :  { %1436 = vrcp.f32 %v384_v45  ;;  %v396_v51 = vand.u32 2147483648, %v384_v45  ;;  %vm390_vm15 = vweird.f32 %v384_v45  ;;  %v394_v52 = vand.u32 2147483647, %v384_v45 }
 0x766   :  { %v397_v54 = vor.u32 1.1754944e-38, %v396_v51  ;;  %vm395_vm2 = vcmp.eq.f32.partialorder %v394_v52, 8.507059e+37 }
 0x76a   :  { %v1437_v46 = vpop.eup %1436 }
 0x76b   :  { %v386_v47 = vmul.f32 %v1437_v46, %v384_v45  ;;  %vm391_vm14 = vweird.f32 %v1437_v46 }
 0x76c   :  { %vm392_vm1 = vmor %vm390_vm15, %vm391_vm14 }
 0x76d   :  { %v387_v48 = vsub.f32 1.0, %v386_v47 }
 0x76f   :  { %v388_v49 = vmul.f32 %v1437_v46, %v387_v48 }
 0x771   :  { %v389_v50 = vadd.f32 %v1437_v46, %v388_v49 }
 0x773   :  { %v393_v53 = vsel %vm392_vm1, %v1437_v46, %v389_v50 }
 0x774   :  { %v398_v56 = vsel %vm395_vm2, %v397_v54, %v393_v53 }
 0x775   :  { %v401_v58 = vmul.f32 %v398_v56, %v339_v31  ;;  %v55_v31 = vld [vmem:[%s1934_s0 + $0x38] sm:$0xff] }
 0x776   :  { %1359 = vmatmul.msk.f32.gmra.mxu0 %vm62_vm0, %v55_v31 }
 0x7d2   :  { %v404_v55 = vpop.permute.xlu0 %403 }
 0x7d3   :  { %v406_v57 = vmul.f32 %v404_v55, %v398_v56 }
 0x7d5   :  { %408 = vrot.lane.b32.xlu1 %v406_v57, %s1567_s26 }
 0x7f3   :  { %v1766_v38 = vpop.f32.mrf.mxu0 }
 0x847   :  { %v409_v59 = vpop.permute.xlu1 %408 }
 0x848   :  { %v411_v60 = vadd.f32 %v409_v59, %v401_v58 }
 0x84a   :  { %1438 = vtanh.f32 %v411_v60 }
 0x850   :  { %v1439_v61 = vpop.eup %1438 }
 0x851   :  { %414 = vrot.lane.b32.xlu2 %v1439_v61, %s1567_s26 }
 0x8ab   :  { %v415_v62 = vpop.permute.xlu2 %414 }
 0x8ac   :  { %v417_v63 = vmul.f32 %v415_v62, %v398_v56 }
 0x8ae   :  { %419 = vrot.lane.b32.xlu0 %v417_v63, %s1568_s27 }
 0x920   :  { %v420_v3 = vpop.permute.xlu0 %419 }
 0x921   :  { %423 = vst.msk [vmem:[#allocation3 + $0x18] sm:$0xff] %vm141_vm5, %v420_v3  ;;  %1367 = vmatmul.msk.f32.vlgmr.msra.gmra.mxu2 %vm141_vm5, %v420_v3  ;;  %v1784_v3 = vld [vmem:[%s1939_s5 + $0x10] sm:$0xff] }
 0x922   :  { %882 = vmatpush.msra.mxu2 %v1779_v1  ;;  %819 = vmatpush.msrb.mxu1 %v1784_v3 }
 0x924   :  { %883 = vmatpush.msra.mxu2 %v1784_v3 }
 0x928   :  { %v715_v4 = vld [vmem:[#allocation3 + $0x18] sm:$0xff] }
 0x929   :  { %1378 = vmatmul.msk.f32.gmra.mxu3 %vm141_vm5, %v715_v4  ;;  %v1791_v4 = vld [vmem:[%s1939_s5 + $0x8] sm:$0xff] }
 0x92a   :  { %820 = vmatpush.msrb.mxu1 %v1791_v4  ;;  %884 = vmatpush.msra.mxu2 %v1791_v4 }
 0x92c   :  { %821 = vmatpush.msrb.mxu1 %v1798_v9  ;;  %885 = vmatpush.msra.mxu2 %v1798_v9 }
 0x9a4   :  { %v449_v11 = vpop.f32.mrf.mxu2 }
 0x9a5   :  { %v452_v12 = vadd.f32 %v449_v11, %v117_v10 }
 0x9a7   :  { %1440 = vtanh.f32 %v452_v12  ;;  %v1368_v14 = vmul.f32 -1.442695, %v452_v12  ;;  %v123_v12 = vadd.f32 %v1674_v8, %v1764_v37 }
 0x9a9   :  { %1442 = vpow2.f32 %v1368_v14 }
 0x9ad   :  { %v1441_v13 = vpop.eup %1440 }
 0x9ae   :  { %475 = vrot.lane.b32.xlu1 %v1441_v13, %s1567_s26 }
 0x9af   :  { %v1443_v15 = vpop.eup %1442 }
 0x9b0   :  { %v456_v16 = vadd.f32 1.0, %v1443_v15  ;;  %v1821_v15 = vld [vmem:[%s1940_s6] ss:$0 sm:$0xff] }
 0x9b2   :  { %1444 = vrcp.f32 %v456_v16  ;;  %v468_v19 = vand.u32 2147483648, %v456_v16  ;;  %vm462_vm4 = vweird.f32 %v456_v16  ;;  %v466_v20 = vand.u32 2147483647, %v456_v16 }
 0x9b4   :  { %v469_v21 = vor.u32 1.1754944e-38, %v468_v19  ;;  %vm467_vm7 = vcmp.eq.f32.partialorder %v466_v20, 8.507059e+37 }
 0x9b8   :  { %v1445_v17 = vpop.eup %1444 }
 0x9b9   :  { %v458_v18 = vmul.f32 %v1445_v17, %v456_v16  ;;  %vm463_vm3 = vweird.f32 %v1445_v17 }
 0x9ba   :  { %vm464_vm6 = vmor %vm462_vm4, %vm463_vm3 }
 0x9bb   :  { %v459_v0 = vsub.f32 1.0, %v458_v18 }
 0x9bd   :  { %v460_v2 = vmul.f32 %v1445_v17, %v459_v0 }
 0x9bf   :  { %v461_v5 = vadd.f32 %v1445_v17, %v460_v2 }
 0x9c1   :  { %v465_v6 = vsel %vm464_vm6, %v1445_v17, %v461_v5 }
 0x9c2   :  { %v470_v23 = vsel %vm467_vm7, %v469_v21, %v465_v6 }
 0x9c3   :  { %v473_v25 = vmul.f32 %v470_v23, %v411_v60 }
 0xa20   :  { %v476_v22 = vpop.permute.xlu1 %475 }
 0xa21   :  { %v478_v24 = vmul.f32 %v476_v22, %v470_v23 }
 0xa23   :  { %480 = vrot.lane.b32.xlu2 %v478_v24, %s1567_s26 }
 0xa7d   :  { %v481_v26 = vpop.permute.xlu2 %480 }
 0xa7e   :  { %v483_v27 = vadd.f32 %v481_v26, %v473_v25 }
 0xa80   :  { %1446 = vtanh.f32 %v483_v27 }
 0xa86   :  { %v1447_v28 = vpop.eup %1446 }
 0xa87   :  { %486 = vrot.lane.b32.xlu0 %v1447_v28, %s1567_s26 }
 0xaf9   :  { %v487_v32 = vpop.permute.xlu0 %486 }
 0xafa   :  { %v489_v33 = vmul.f32 %v487_v32, %v470_v23 }
 0xafc   :  { %491 = vrot.lane.b32.xlu1 %v489_v33, %s1568_s27 }
 0xb6e   :  { %v492_v34 = vpop.permute.xlu1 %491 }
 0xb6f   :  { %495 = vst.msk [vmem:[#allocation3 + $0x20] sm:$0xff] %vm141_vm5, %v492_v34  ;;  %1369 = vmatmul.msk.f32.vlgmr.msrb.gmra.mxu0 %vm141_vm5, %v492_v34 }
 0xb76   :  { %v716_v35 = vld [vmem:[#allocation3 + $0x20] sm:$0xff] }
 0xb77   :  { %1379 = vmatmul.msk.f32.gmra.mxu3 %vm141_vm5, %v716_v35 }
 0xbec   :  { %v521_v40 = vpop.f32.mrf.mxu0 }
 0xbed   :  { %v524_v41 = vadd.f32 %v521_v40, %v120_v39 }
 0xbef   :  { %1448 = vtanh.f32 %v524_v41  ;;  %v1370_v43 = vmul.f32 -1.442695, %v524_v41 }
 0xbf1   :  { %1450 = vpow2.f32 %v1370_v43 }
 0xbf5   :  { %v1449_v42 = vpop.eup %1448 }
 0xbf6   :  { %547 = vrot.lane.b32.xlu2 %v1449_v42, %s1567_s26 }
 0xbf7   :  { %v1451_v44 = vpop.eup %1450 }
 0xbf8   :  { %v528_v45 = vadd.f32 1.0, %v1451_v44 }
 0xbfa   :  { %1452 = vrcp.f32 %v528_v45  ;;  %v540_v51 = vand.u32 2147483648, %v528_v45  ;;  %vm534_vm8 = vweird.f32 %v528_v45  ;;  %v538_v52 = vand.u32 2147483647, %v528_v45 }
 0xbfc   :  { %v541_v54 = vor.u32 1.1754944e-38, %v540_v51  ;;  %vm539_vm10 = vcmp.eq.f32.partialorder %v538_v52, 8.507059e+37 }
 0xc00   :  { %v1453_v46 = vpop.eup %1452 }
 0xc01   :  { %v530_v47 = vmul.f32 %v1453_v46, %v528_v45  ;;  %vm535_vm0 = vweird.f32 %v1453_v46 }
 0xc02   :  { %vm536_vm9 = vmor %vm534_vm8, %vm535_vm0 }
 0xc03   :  { %v531_v48 = vsub.f32 1.0, %v530_v47 }
 0xc05   :  { %v532_v49 = vmul.f32 %v1453_v46, %v531_v48 }
 0xc07   :  { %v533_v50 = vadd.f32 %v1453_v46, %v532_v49 }
 0xc09   :  { %v537_v53 = vsel %vm536_vm9, %v1453_v46, %v533_v50 }
 0xc0a   :  { %v542_v56 = vsel %vm539_vm10, %v541_v54, %v537_v53 }
 0xc0b   :  { %v545_v58 = vmul.f32 %v542_v56, %v483_v27 }
 0xc50   :  { %v548_v55 = vpop.permute.xlu2 %547 }
 0xc51   :  { %v550_v57 = vmul.f32 %v548_v55, %v542_v56 }
 0xc53   :  { %552 = vrot.lane.b32.xlu0 %v550_v57, %s1567_s26 }
 0xcc5   :  { %v553_v59 = vpop.permute.xlu0 %552 }
 0xcc6   :  { %v1771_v60 = vadd.f32 %v553_v59, %v545_v58 }
 0xcc8   :  { %1454 = vtanh.f32 %v1771_v60 }
 0xcce   :  { %v1455_v61 = vpop.eup %1454 }
 0xccf   :  { %558 = vrot.lane.b32.xlu1 %v1455_v61, %s1567_s26 }
 0xd41   :  { %v559_v62 = vpop.permute.xlu1 %558 }
 0xd42   :  { %v561_v63 = vmul.f32 %v559_v62, %v542_v56 }
 0xd44   :  { %563 = vrot.lane.b32.xlu2 %v561_v63, %s1568_s27 }
 0xd9e   :  { %v564_v10 = vpop.permute.xlu2 %563 }
 0xd9f   :  { %567 = vst.msk [vmem:[#allocation3 + $0x28] sm:$0xff] %vm141_vm5, %v564_v10  ;;  %1371 = vmatmul.msk.f32.vlgmr.msra.gmra.mxu1 %vm141_vm5, %v564_v10 }
 0xda0   :  { %946 = vmatpush.msra.mxu1 %v1779_v1 }
 0xda2   :  { %947 = vmatpush.msra.mxu1 %v1784_v3 }
 0xda4   :  { %948 = vmatpush.msra.mxu1 %v1791_v4 }
 0xda6   :  { %v717_v11 = vld [vmem:[#allocation3 + $0x28] sm:$0xff]  ;;  %949 = vmatpush.msra.mxu1 %v1798_v9 }
 0xda7   :  { %1380 = vmatmul.msk.f32.gmra.mxu3 %vm141_vm5, %v717_v11  ;;  %822 = vmatmul.f32.vlgmr.msrb.gmra.mxu1 %v1566_v7  ;;  %v769_v7 = vpop.f32.mrf.mxu3 }
 0xda8   :  { %1074 = vmatpush.msrb.mxu1 %v1779_v1  ;;  %v770_v16 = vadd.f32 %v1821_v15, %v769_v7 }
 0xdaa   :  { %1075 = vmatpush.msrb.mxu1 %v1784_v3 }
 0xdac   :  { %1076 = vmatpush.msrb.mxu1 %v1791_v4 }
 0xdae   :  { %1077 = vmatpush.msrb.mxu1 %v1798_v9 }
 0xdaf   :  { %v772_v63 = vpop.f32.mrf.mxu3 }
 0xdb0   :  { %v773_v10 = vadd.f32 %v1821_v15, %v772_v63 }
 0xe1c   :  { %v593_v13 = vpop.f32.mrf.mxu1 }
 0xe1d   :  { %v596_v14 = vadd.f32 %v593_v13, %v123_v12 }
 0xe1f   :  { %1456 = vtanh.f32 %v596_v14  ;;  %v1372_v8 = vmul.f32 -1.442695, %v596_v14 }
 0xe24   :  { %v823_v17 = vpop.f32.mrf.mxu1 }
 0xe25   :  { %v1457_v18 = vpop.eup %1456  ;;  %v826_v0 = vadd.f32 %v823_v17, %v770_v16 }
 0xe26   :  { %619 = vrot.lane.b32.xlu0 %v1457_v18, %s1567_s26 }
 0xe27   :  { %1458 = vtanh.f32 %v826_v0  ;;  %v1383_v5 = vmul.f32 -1.442695, %v826_v0 }
 0xe28   :  { %1460 = vpow2.f32 %v1372_v8 }
 0xe29   :  { %1462 = vpow2.f32 %v1383_v5 }
 0xe2d   :  { %v1459_v2 = vpop.eup %1458 }
 0xe2e   :  { %849 = vrot.lane.b32.xlu1 %v1459_v2, %s1567_s26  ;;  %v1461_v19 = vpop.eup %1460 }
 0xe2f   :  { %v600_v20 = vadd.f32 1.0, %v1461_v19  ;;  %v1463_v6 = vpop.eup %1462 }
 0xe30   :  { %v830_v21 = vadd.f32 1.0, %v1463_v6 }
 0xe31   :  { %1464 = vrcp.f32 %v600_v20  ;;  %v612_v30 = vand.u32 2147483648, %v600_v20  ;;  %vm606_vm12 = vweird.f32 %v600_v20  ;;  %v610_v31 = vand.u32 2147483647, %v600_v20 }
 0xe32   :  { %1466 = vrcp.f32 %v830_v21  ;;  %v842_v40 = vand.u32 2147483648, %v830_v21  ;;  %vm836_vm1 = vweird.f32 %v830_v21  ;;  %v840_v41 = vand.u32 2147483647, %v830_v21 }
 0xe33   :  { %v613_v34 = vor.u32 1.1754944e-38, %v612_v30  ;;  %vm611_vm14 = vcmp.eq.f32.partialorder %v610_v31, 8.507059e+37  ;;  %v775_v31 = vpop.f32.mrf.mxu3 }
 0xe34   :  { %v843_v43 = vor.u32 1.1754944e-38, %v842_v40  ;;  %vm841_vm3 = vcmp.eq.f32.partialorder %v840_v41, 8.507059e+37 }
 0xe37   :  { %v1465_v22 = vpop.eup %1464 }
 0xe38   :  { %v602_v23 = vmul.f32 %v1465_v22, %v600_v20  ;;  %v1467_v25 = vpop.eup %1466  ;;  %vm607_vm11 = vweird.f32 %v1465_v22 }
 0xe39   :  { %v832_v27 = vmul.f32 %v1467_v25, %v830_v21  ;;  %vm608_vm13 = vmor %vm606_vm12, %vm607_vm11  ;;  %vm837_vm15 = vweird.f32 %v1467_v25 }
 0xe3a   :  { %v603_v24 = vsub.f32 1.0, %v602_v23  ;;  %vm838_vm2 = vmor %vm836_vm1, %vm837_vm15 }
 0xe3b   :  { %v833_v29 = vsub.f32 1.0, %v832_v27 }
 0xe3c   :  { %v604_v26 = vmul.f32 %v1465_v22, %v603_v24 }
 0xe3d   :  { %v834_v33 = vmul.f32 %v1467_v25, %v833_v29 }
 0xe3e   :  { %v605_v28 = vadd.f32 %v1465_v22, %v604_v26 }
 0xe3f   :  { %v835_v39 = vadd.f32 %v1467_v25, %v834_v33 }
 0xe40   :  { %v609_v32 = vsel %vm608_vm13, %v1465_v22, %v605_v28 }
 0xe41   :  { %v614_v36 = vsel %vm611_vm14, %v613_v34, %v609_v32  ;;  %v839_v42 = vsel %vm838_vm2, %v1467_v25, %v835_v39  ;;  %v776_v32 = vadd.f32 %v1821_v15, %v775_v31 }
 0xe42   :  { %v844_v45 = vsel %vm841_vm3, %v843_v43, %v839_v42  ;;  %v617_v47 = vmul.f32 %v614_v36, %v1771_v60 }
 0xe43   :  { %v847_v51 = vmul.f32 0.0, %v844_v45 }
 0xe98   :  { %v620_v35 = vpop.permute.xlu0 %619 }
 0xe99   :  { %v622_v37 = vmul.f32 %v620_v35, %v614_v36 }
 0xe9b   :  { %624 = vrot.lane.b32.xlu2 %v622_v37, %s1567_s26 }
 0xea0   :  { %v850_v44 = vpop.permute.xlu1 %849 }
 0xea1   :  { %v852_v46 = vmul.f32 %v850_v44, %v844_v45 }
 0xea3   :  { %854 = vrot.lane.b32.xlu0 %v852_v46, %s1567_s26 }
 0xef5   :  { %v625_v48 = vpop.permute.xlu2 %624 }
 0xef6   :  { %v1829_v49 = vadd.f32 %v625_v48, %v617_v47 }
 0xef8   :  { %1468 = vtanh.f32 %v1829_v49 }
 0xefe   :  { %v1469_v50 = vpop.eup %1468 }
 0xeff   :  { %630 = vrot.lane.b32.xlu1 %v1469_v50, %s1567_s26 }
 0xf15   :  { %v855_v52 = vpop.permute.xlu0 %854 }
 0xf16   :  { %v857_v53 = vadd.f32 %v855_v52, %v847_v51 }
 0xf18   :  { %1470 = vtanh.f32 %v857_v53 }
 0xf1e   :  { %v1471_v54 = vpop.eup %1470 }
 0xf1f   :  { %860 = vrot.lane.b32.xlu2 %v1471_v54, %s1567_s26 }
 0xf71   :  { %v631_v55 = vpop.permute.xlu1 %630 }
 0xf72   :  { %v633_v56 = vmul.f32 %v631_v55, %v614_v36 }
 0xf74   :  { %635 = vrot.lane.b32.xlu0 %v633_v56, %s1568_s27 }
 0xf79   :  { %v861_v57 = vpop.permute.xlu2 %860 }
 0xf7a   :  { %v863_v58 = vmul.f32 %v861_v57, %v844_v45 }
 0xf7c   :  { %866 = vrot.lane.b32.xlu1 %v863_v58, %s1568_s27 }
 0xfe6   :  { %v636_v59 = vpop.permute.xlu0 %635 }
 0xfe7   :  { %639 = vst.msk [vmem:[#allocation3 + $0x30] sm:$0xff] %vm141_vm5, %v636_v59  ;;  %1373 = vmatmul.msk.f32.vlgmr.msrb.gmra.mxu2 %vm141_vm5, %v636_v59 }
 0xfe8   :  { %1010 = vmatpush.msrb.mxu2 %v1779_v1 }
 0xfea   :  { %1011 = vmatpush.msrb.mxu2 %v1784_v3 }
 0xfec   :  { %1012 = vmatpush.msrb.mxu2 %v1791_v4 }
 0xfee   :  { %v867_v60 = vpop.permute.xlu1 %866  ;;  %v718_v61 = vld [vmem:[#allocation3 + $0x30] sm:$0xff]  ;;  %1013 = vmatpush.msrb.mxu2 %v1798_v9 }
 0xfef   :  { %1381 = vmatmul.msk.f32.gmra.mxu3 %vm141_vm5, %v718_v61  ;;  %1384 = vmatmul.msk.f32.vlgmr.msra.gmra.mxu2 %vm141_vm5, %v867_v60  ;;  %v778_v60 = vpop.f32.mrf.mxu3 }
 0xff0   :  { %1138 = vmatpush.msra.mxu2 %v1779_v1  ;;  %v779_v61 = vadd.f32 %v1821_v15, %v778_v60 }
 0xff2   :  { %1139 = vmatpush.msra.mxu2 %v1784_v3 }
 0xff4   :  { %1140 = vmatpush.msra.mxu2 %v1791_v4 }
 0xff6   :  { %1141 = vmatpush.msra.mxu2 %v1798_v9 }
0x106a   :  { %v1848_v62 = vpop.f32.mrf.mxu2 }
0x1072   :  { %v887_v11 = vpop.f32.mrf.mxu2 }
0x1073   :  { %v890_v12 = vadd.f32 %v887_v11, %v773_v10 }
0x1075   :  { %1472 = vtanh.f32 %v890_v12  ;;  %v1385_v14 = vmul.f32 -1.442695, %v890_v12 }
0x1077   :  { %1474 = vpow2.f32 %v1385_v14 }
0x107b   :  { %v1473_v13 = vpop.eup %1472 }
0x107c   :  { %913 = vrot.lane.b32.xlu2 %v1473_v13, %s1567_s26 }
0x107d   :  { %v1475_v7 = vpop.eup %1474 }
0x107e   :  { %v894_v16 = vadd.f32 1.0, %v1475_v7 }
0x1080   :  { %1476 = vrcp.f32 %v894_v16  ;;  %v906_v5 = vand.u32 2147483648, %v894_v16  ;;  %vm900_vm6 = vweird.f32 %v894_v16  ;;  %v904_v19 = vand.u32 2147483647, %v894_v16 }
0x1082   :  { %v907_v6 = vor.u32 1.1754944e-38, %v906_v5  ;;  %vm905_vm0 = vcmp.eq.f32.partialorder %v904_v19, 8.507059e+37 }
0x1086   :  { %v1477_v17 = vpop.eup %1476 }
0x1087   :  { %v896_v18 = vmul.f32 %v1477_v17, %v894_v16  ;;  %vm901_vm4 = vweird.f32 %v1477_v17 }
0x1088   :  { %vm902_vm7 = vmor %vm900_vm6, %vm901_vm4 }
0x1089   :  { %v897_v0 = vsub.f32 1.0, %v896_v18 }
0x108b   :  { %v898_v2 = vmul.f32 %v1477_v17, %v897_v0 }
0x108d   :  { %v899_v8 = vadd.f32 %v1477_v17, %v898_v2 }
0x108f   :  { %v903_v20 = vsel %vm902_vm7, %v1477_v17, %v899_v8 }
0x1090   :  { %v908_v22 = vsel %vm905_vm0, %v907_v6, %v903_v20 }
0x1091   :  { %v911_v24 = vmul.f32 %v908_v22, %v857_v53 }
0x10d6   :  { %v914_v21 = vpop.permute.xlu2 %913 }
0x10d7   :  { %v916_v23 = vmul.f32 %v914_v21, %v908_v22 }
0x10d9   :  { %918 = vrot.lane.b32.xlu0 %v916_v23, %s1567_s26 }
0x114b   :  { %v919_v25 = vpop.permute.xlu0 %918 }
0x114c   :  { %v921_v26 = vadd.f32 %v919_v25, %v911_v24  ;;  %v781_v25 = vpop.f32.mrf.mxu3 }
0x114e   :  { %1478 = vtanh.f32 %v921_v26 }
0x1154   :  { %v1479_v27 = vpop.eup %1478 }
0x1155   :  { %924 = vrot.lane.b32.xlu1 %v1479_v27, %s1567_s26 }
0x11c7   :  { %v925_v28 = vpop.permute.xlu1 %924 }
0x11c8   :  { %v927_v29 = vmul.f32 %v925_v28, %v908_v22 }
0x11ca   :  { %930 = vrot.lane.b32.xlu2 %v927_v29, %s1568_s27 }
0x1224   :  { %v931_v30 = vpop.permute.xlu2 %930 }
0x1225   :  { %1386 = vmatmul.msk.f32.vlgmr.msra.gmra.mxu1 %vm141_vm5, %v931_v30 }
0x1226   :  { %1202 = vmatpush.msra.mxu1 %v1779_v1 }
0x1228   :  { %1203 = vmatpush.msra.mxu1 %v1784_v3 }
0x122a   :  { %1204 = vmatpush.msra.mxu1 %v1791_v4 }
0x122c   :  { %1205 = vmatpush.msra.mxu1 %v1798_v9 }
0x12a2   :  { %v951_v33 = vpop.f32.mrf.mxu1 }
0x12a3   :  { %v954_v34 = vadd.f32 %v951_v33, %v776_v32 }
0x12a5   :  { %1480 = vtanh.f32 %v954_v34  ;;  %v1387_v36 = vmul.f32 -1.442695, %v954_v34 }
0x12a7   :  { %1482 = vpow2.f32 %v1387_v36 }
0x12ab   :  { %v1481_v35 = vpop.eup %1480 }
0x12ac   :  { %977 = vrot.lane.b32.xlu0 %v1481_v35, %s1567_s26 }
0x12ad   :  { %v1483_v37 = vpop.eup %1482 }
0x12ae   :  { %v958_v39 = vadd.f32 1.0, %v1483_v37 }
0x12b0   :  { %1484 = vrcp.f32 %v958_v39  ;;  %v970_v45 = vand.u32 2147483648, %v958_v39  ;;  %vm964_vm9 = vweird.f32 %v958_v39  ;;  %v968_v46 = vand.u32 2147483647, %v958_v39 }
0x12b2   :  { %v971_v48 = vor.u32 1.1754944e-38, %v970_v45  ;;  %vm969_vm11 = vcmp.eq.f32.partialorder %v968_v46, 8.507059e+37 }
0x12b6   :  { %v1485_v40 = vpop.eup %1484 }
0x12b7   :  { %v960_v41 = vmul.f32 %v1485_v40, %v958_v39  ;;  %vm965_vm8 = vweird.f32 %v1485_v40 }
0x12b8   :  { %vm966_vm10 = vmor %vm964_vm9, %vm965_vm8 }
0x12b9   :  { %v961_v42 = vsub.f32 1.0, %v960_v41 }
0x12bb   :  { %v962_v43 = vmul.f32 %v1485_v40, %v961_v42 }
0x12bd   :  { %v963_v44 = vadd.f32 %v1485_v40, %v962_v43 }
0x12bf   :  { %v967_v47 = vsel %vm966_vm10, %v1485_v40, %v963_v44 }
0x12c0   :  { %v972_v51 = vsel %vm969_vm11, %v971_v48, %v967_v47 }
0x12c1   :  { %v975_v53 = vmul.f32 %v972_v51, %v921_v26  ;;  %v782_v26 = vadd.f32 %v1821_v15, %v781_v25 }
0x131e   :  { %v978_v50 = vpop.permute.xlu0 %977 }
0x131f   :  { %v980_v52 = vmul.f32 %v978_v50, %v972_v51 }
0x1321   :  { %982 = vrot.lane.b32.xlu1 %v980_v52, %s1567_s26 }
0x1393   :  { %v983_v54 = vpop.permute.xlu1 %982 }
0x1394   :  { %v985_v55 = vadd.f32 %v983_v54, %v975_v53  ;;  %v784_v54 = vpop.f32.mrf.mxu3 }
0x1396   :  { %1486 = vtanh.f32 %v985_v55 }
0x139c   :  { %v1487_v56 = vpop.eup %1486 }
0x139d   :  { %988 = vrot.lane.b32.xlu2 %v1487_v56, %s1567_s26 }
0x13f7   :  { %v989_v57 = vpop.permute.xlu2 %988 }
0x13f8   :  { %v991_v58 = vmul.f32 %v989_v57, %v972_v51 }
0x13fa   :  { %994 = vrot.lane.b32.xlu0 %v991_v58, %s1568_s27 }
0x146c   :  { %v995_v59 = vpop.permute.xlu0 %994 }
0x146d   :  { %1388 = vmatmul.msk.f32.vlgmr.msrb.gmra.mxu2 %vm141_vm5, %v995_v59 }
0x146e   :  { %1266 = vmatpush.msrb.mxu2 %v1779_v1 }
0x1470   :  { %1267 = vmatpush.msrb.mxu2 %v1784_v3 }
0x1472   :  { %1268 = vmatpush.msrb.mxu2 %v1791_v4 }
0x1474   :  { %1269 = vmatpush.msrb.mxu2 %v1798_v9 }
0x14f0   :  { %v1015_v63 = vpop.f32.mrf.mxu2 }
0x14f1   :  { %v1018_v10 = vadd.f32 %v1015_v63, %v779_v61 }
0x14f3   :  { %1488 = vtanh.f32 %v1018_v10  ;;  %v1389_v12 = vmul.f32 -1.442695, %v1018_v10 }
0x14f5   :  { %1490 = vpow2.f32 %v1389_v12 }
0x14f9   :  { %v1489_v11 = vpop.eup %1488 }
0x14fa   :  { %1041 = vrot.lane.b32.xlu1 %v1489_v11, %s1567_s26 }
0x14fb   :  { %v1491_v13 = vpop.eup %1490 }
0x14fc   :  { %v1022_v14 = vadd.f32 1.0, %v1491_v13 }
0x14fe   :  { %1492 = vrcp.f32 %v1022_v14  ;;  %v1034_v9 = vand.u32 2147483648, %v1022_v14  ;;  %vm1028_vm13 = vweird.f32 %v1022_v14  ;;  %v1032_v17 = vand.u32 2147483647, %v1022_v14 }
0x1500   :  { %v1035_v0 = vor.u32 1.1754944e-38, %v1034_v9  ;;  %vm1033_vm15 = vcmp.eq.f32.partialorder %v1032_v17, 8.507059e+37 }
0x1504   :  { %v1493_v1 = vpop.eup %1492 }
0x1505   :  { %v1024_v3 = vmul.f32 %v1493_v1, %v1022_v14  ;;  %vm1029_vm12 = vweird.f32 %v1493_v1 }
0x1506   :  { %vm1030_vm14 = vmor %vm1028_vm13, %vm1029_vm12 }
0x1507   :  { %v1025_v7 = vsub.f32 1.0, %v1024_v3 }
0x1509   :  { %v1026_v4 = vmul.f32 %v1493_v1, %v1025_v7  ;;  %v1536_v7 = vld [vmem:[%s1937_s3] ss:$0 sm:$0xff] }
0x150b   :  { %v1027_v16 = vadd.f32 %v1493_v1, %v1026_v4  ;;  %v126_v4 = vadd.f32 %v1536_v7, %v1766_v38 }
0x150d   :  { %v1031_v18 = vsel %vm1030_vm14, %v1493_v1, %v1027_v16  ;;  %v668_v9 = vadd.f32 %v1848_v62, %v126_v4 }
0x150e   :  { %v1036_v8 = vsel %vm1033_vm15, %v1035_v0, %v1031_v18 }
0x150f   :  { %v1039_v19 = vmul.f32 %v1036_v8, %v985_v55  ;;  %v785_v55 = vadd.f32 %v1821_v15, %v784_v54 }
0x156c   :  { %v1042_v2 = vpop.permute.xlu1 %1041 }
0x156d   :  { %v1044_v5 = vmul.f32 %v1042_v2, %v1036_v8 }
0x156f   :  { %1046 = vrot.lane.b32.xlu2 %v1044_v5, %s1567_s26 }
0x15c9   :  { %v1047_v20 = vpop.permute.xlu2 %1046 }
0x15ca   :  { %v1049_v6 = vadd.f32 %v1047_v20, %v1039_v19  ;;  %v1374_v20 = vmul.f32 -1.442695, %v668_v9 }
0x15cc   :  { %1494 = vtanh.f32 %v1049_v6 }
0x15d2   :  { %v1495_v21 = vpop.eup %1494 }
0x15d3   :  { %1052 = vrot.lane.b32.xlu0 %v1495_v21, %s1567_s26 }
0x1645   :  { %v1053_v22 = vpop.permute.xlu0 %1052 }
0x1646   :  { %v1055_v23 = vmul.f32 %v1053_v22, %v1036_v8 }
0x1648   :  { %1058 = vrot.lane.b32.xlu1 %v1055_v23, %s1568_s27 }
0x16ba   :  { %v1059_v24 = vpop.permute.xlu1 %1058 }
0x16bb   :  { %1390 = vmatmul.msk.f32.vlgmr.msrb.gmra.mxu1 %vm141_vm5, %v1059_v24 }
0x1738   :  { %v1079_v27 = vpop.f32.mrf.mxu1 }
0x1739   :  { %v1082_v28 = vadd.f32 %v1079_v27, %v782_v26 }
0x173b   :  { %1496 = vtanh.f32 %v1082_v28  ;;  %v1391_v30 = vmul.f32 -1.442695, %v1082_v28 }
0x173d   :  { %1498 = vpow2.f32 %v1391_v30 }
0x1741   :  { %v1497_v29 = vpop.eup %1496 }
0x1742   :  { %1105 = vrot.lane.b32.xlu2 %v1497_v29, %s1567_s26 }
0x1743   :  { %v1499_v31 = vpop.eup %1498 }
0x1744   :  { %v1086_v32 = vadd.f32 1.0, %v1499_v31 }
0x1746   :  { %1500 = vrcp.f32 %v1086_v32  ;;  %v1098_v39 = vand.u32 2147483648, %v1086_v32  ;;  %vm1092_vm2 = vweird.f32 %v1086_v32  ;;  %v1096_v40 = vand.u32 2147483647, %v1086_v32 }
0x1748   :  { %v1099_v42 = vor.u32 1.1754944e-38, %v1098_v39  ;;  %vm1097_vm4 = vcmp.eq.f32.partialorder %v1096_v40, 8.507059e+37 }
0x174c   :  { %v1501_v33 = vpop.eup %1500 }
0x174d   :  { %v1088_v34 = vmul.f32 %v1501_v33, %v1086_v32  ;;  %vm1093_vm1 = vweird.f32 %v1501_v33 }
0x174e   :  { %vm1094_vm3 = vmor %vm1092_vm2, %vm1093_vm1 }
0x174f   :  { %v1089_v35 = vsub.f32 1.0, %v1088_v34 }
0x1751   :  { %v1090_v36 = vmul.f32 %v1501_v33, %v1089_v35 }
0x1753   :  { %v1091_v37 = vadd.f32 %v1501_v33, %v1090_v36  ;;  %v787_v36 = vpop.f32.mrf.mxu3 }
0x1755   :  { %v1095_v41 = vsel %vm1094_vm3, %v1501_v33, %v1091_v37  ;;  %v788_v37 = vadd.f32 %v1821_v15, %v787_v36 }
0x1756   :  { %v1100_v44 = vsel %vm1097_vm4, %v1099_v42, %v1095_v41 }
0x1757   :  { %v1103_v46 = vmul.f32 %v1100_v44, %v1049_v6 }
0x179c   :  { %v1106_v43 = vpop.permute.xlu2 %1105 }
0x179d   :  { %v1108_v45 = vmul.f32 %v1106_v43, %v1100_v44 }
0x179f   :  { %1110 = vrot.lane.b32.xlu0 %v1108_v45, %s1567_s26 }
0x1811   :  { %v1111_v47 = vpop.permute.xlu0 %1110 }
0x1812   :  { %v1113_v48 = vadd.f32 %v1111_v47, %v1103_v46 }
0x1814   :  { %1502 = vtanh.f32 %v1113_v48 }
0x181a   :  { %v1503_v50 = vpop.eup %1502 }
0x181b   :  { %1116 = vrot.lane.b32.xlu1 %v1503_v50, %s1567_s26 }
0x188d   :  { %v1117_v51 = vpop.permute.xlu1 %1116 }
0x188e   :  { %v1119_v52 = vmul.f32 %v1117_v51, %v1100_v44 }
0x1890   :  { %1122 = vrot.lane.b32.xlu2 %v1119_v52, %s1568_s27 }
0x18ea   :  { %v1123_v53 = vpop.permute.xlu2 %1122 }
0x18eb   :  { %1392 = vmatmul.msk.f32.vlgmr.msra.gmra.mxu2 %vm141_vm5, %v1123_v53 }
0x196e   :  { %v1143_v56 = vpop.f32.mrf.mxu2 }
0x196f   :  { %v1146_v57 = vadd.f32 %v1143_v56, %v785_v55 }
0x1971   :  { %1504 = vtanh.f32 %v1146_v57  ;;  %v1393_v59 = vmul.f32 -1.442695, %v1146_v57 }
0x1973   :  { %1506 = vpow2.f32 %v1393_v59 }
0x1977   :  { %v1505_v58 = vpop.eup %1504 }
0x1978   :  { %1169 = vrot.lane.b32.xlu0 %v1505_v58, %s1567_s26 }
0x1979   :  { %v1507_v60 = vpop.eup %1506 }
0x197a   :  { %v1150_v61 = vadd.f32 1.0, %v1507_v60 }
0x197c   :  { %1508 = vrcp.f32 %v1150_v61  ;;  %v1162_v14 = vand.u32 2147483648, %v1150_v61  ;;  %vm1156_vm7 = vweird.f32 %v1150_v61  ;;  %v1160_v1 = vand.u32 2147483647, %v1150_v61 }
0x197d   :  { %1510 = vtanh.f32 %v668_v9 }
0x197e   :  { %v1163_v16 = vor.u32 1.1754944e-38, %v1162_v14  ;;  %vm1161_vm8 = vcmp.eq.f32.partialorder %v1160_v1, 8.507059e+37 }
0x1982   :  { %v1509_v63 = vpop.eup %1508 }
0x1983   :  { %v1152_v10 = vmul.f32 %v1509_v63, %v1150_v61  ;;  %vm1157_vm6 = vweird.f32 %v1509_v63  ;;  %v1511_v2 = vpop.eup %1510 }
0x1984   :  { %vm1158_vm0 = vmor %vm1156_vm7, %vm1157_vm6  ;;  %vm1345_vm7 = vcmask 15360  }
0x1985   :  { %v1153_v11 = vsub.f32 1.0, %v1152_v10 }
0x1987   :  { %v1154_v12 = vmul.f32 %v1509_v63, %v1153_v11 }
0x1989   :  { %v1155_v13 = vadd.f32 %v1509_v63, %v1154_v12 }
0x198b   :  { %v1159_v3 = vsel %vm1158_vm0, %v1509_v63, %v1155_v13 }
0x198c   :  { %v1164_v18 = vsel %vm1161_vm8, %v1163_v16, %v1159_v3 }
0x198d   :  { %v1167_v8 = vmul.f32 %v1164_v18, %v1113_v48 }
0x19ea   :  { %v1170_v17 = vpop.permute.xlu0 %1169 }
0x19eb   :  { %v1172_v0 = vmul.f32 %v1170_v17, %v1164_v18 }
0x19ed   :  { %1174 = vrot.lane.b32.xlu1 %v1172_v0, %s1567_s26 }
0x19f5   :  { %691 = vrot.lane.b32.xlu1 %v1511_v2, %s1567_s26 }
0x1a5f   :  { %v1175_v5 = vpop.permute.xlu1 %1174 }
0x1a60   :  { %v1891_v19 = vadd.f32 %v1175_v5, %v1167_v8 }
0x1a62   :  { %1512 = vtanh.f32 %v1891_v19 }
0x1a63   :  { %1514 = vpow2.f32 %v1374_v20 }
0x1a67   :  { %v692_v32 = vpop.permute.xlu1 %691 }
0x1a68   :  { %v1513_v38 = vpop.eup %1512 }
0x1a69   :  { %1180 = vrot.lane.b32.xlu2 %v1513_v38, %s1567_s26  ;;  %v1515_v62 = vpop.eup %1514 }
0x1a6a   :  { %v672_v6 = vadd.f32 1.0, %v1515_v62 }
0x1a6c   :  { %1516 = vrcp.f32 %v672_v6  ;;  %v684_v28 = vand.u32 2147483648, %v672_v6  ;;  %vm678_vm10 = vweird.f32 %v672_v6  ;;  %v682_v29 = vand.u32 2147483647, %v672_v6 }
0x1a6e   :  { %v685_v31 = vor.u32 1.1754944e-38, %v684_v28  ;;  %vm683_vm12 = vcmp.eq.f32.partialorder %v682_v29, 8.507059e+37 }
0x1a72   :  { %v1517_v21 = vpop.eup %1516 }
0x1a73   :  { %v674_v22 = vmul.f32 %v1517_v21, %v672_v6  ;;  %vm679_vm9 = vweird.f32 %v1517_v21 }
0x1a74   :  { %vm680_vm11 = vmor %vm678_vm10, %vm679_vm9 }
0x1a75   :  { %v675_v23 = vsub.f32 1.0, %v674_v22 }
0x1a77   :  { %v676_v24 = vmul.f32 %v1517_v21, %v675_v23 }
0x1a79   :  { %v677_v26 = vadd.f32 %v1517_v21, %v676_v24 }
0x1a7b   :  { %v681_v30 = vsel %vm680_vm11, %v1517_v21, %v677_v26 }
0x1a7c   :  { %v686_v33 = vsel %vm683_vm12, %v685_v31, %v681_v30  ;;  %v1315_v31 = vld [vmem:[%s1941_s7 + $0x18] sm:$0xff] }
0x1a7d   :  { %v694_v34 = vmul.f32 %v692_v32, %v686_v33  ;;  %v689_v42 = vmul.f32 %v686_v33, %v1829_v49  ;;  %v1314_v32 = vld [vmem:[%s1941_s7 + $0x10] sm:$0xff]  ;;  %1337 = vmatpush.msrb.mxu1 %v1315_v31 }
0x1a7f   :  { %1338 = vmatpush.msrb.mxu1 %v1314_v32 }
0x1ac3   :  { %v1181_v25 = vpop.permute.xlu2 %1180 }
0x1ac4   :  { %v1183_v27 = vmul.f32 %v1181_v25, %v1164_v18 }
0x1ac6   :  { %1186 = vrot.lane.b32.xlu0 %v1183_v27, %s1568_s27 }
0x1ace   :  { %696 = vrot.lane.b32.xlu0 %v694_v34, %s1567_s26  ;;  %v1312_v34 = vld [vmem:[%s1941_s7] sm:$0xff] }
0x1b38   :  { %v1187_v35 = vpop.permute.xlu0 %1186 }
0x1b39   :  { %1394 = vmatmul.msk.f32.vlgmr.msra.gmra.mxu1 %vm141_vm5, %v1187_v35 }
0x1b40   :  { %v697_v41 = vpop.permute.xlu0 %696 }
0x1b41   :  { %v699_v43 = vadd.f32 %v697_v41, %v689_v42 }
0x1bb6   :  { %v1207_v39 = vpop.f32.mrf.mxu1 }
0x1bb7   :  { %v1210_v40 = vadd.f32 %v1207_v39, %v788_v37  ;;  %v1407_v39 = vld [vmem:[%s1942_s8] ss:$0 sm:$0xff] }
0x1bb9   :  { %1518 = vtanh.f32 %v1210_v40  ;;  %v1395_v46 = vmul.f32 -1.442695, %v1210_v40 }
0x1bba   :  { %1520 = vtanh.f32 %v699_v43 }
0x1bbb   :  { %1522 = vpow2.f32 %v1395_v46 }
0x1bbf   :  { %v1519_v44 = vpop.eup %1518 }
0x1bc0   :  { %1233 = vrot.lane.b32.xlu2 %v1519_v44, %s1567_s26  ;;  %v1521_v45 = vpop.eup %1520 }
0x1bc1   :  { %v1523_v47 = vpop.eup %1522 }
0x1bc2   :  { %v1214_v48 = vadd.f32 1.0, %v1523_v47 }
0x1bc4   :  { %1524 = vrcp.f32 %v1214_v48  ;;  %v1226_v49 = vand.u32 2147483648, %v1214_v48  ;;  %vm1220_vm14 = vweird.f32 %v1214_v48  ;;  %v1224_v55 = vand.u32 2147483647, %v1214_v48 }
0x1bc6   :  { %v1227_v57 = vor.u32 1.1754944e-38, %v1226_v49  ;;  %vm1225_vm1 = vcmp.eq.f32.partialorder %v1224_v55, 8.507059e+37 }
0x1bc8   :  { %702 = vrot.lane.b32.xlu2 %v1521_v45, %s1567_s26 }
0x1bca   :  { %v1525_v50 = vpop.eup %1524 }
0x1bcb   :  { %v1216_v51 = vmul.f32 %v1525_v50, %v1214_v48  ;;  %vm1221_vm13 = vweird.f32 %v1525_v50 }
0x1bcc   :  { %vm1222_vm15 = vmor %vm1220_vm14, %vm1221_vm13 }
0x1bcd   :  { %v1217_v52 = vsub.f32 1.0, %v1216_v51 }
0x1bcf   :  { %v1218_v53 = vmul.f32 %v1525_v50, %v1217_v52 }
0x1bd1   :  { %v1219_v54 = vadd.f32 %v1525_v50, %v1218_v53 }
0x1bd3   :  { %v1223_v56 = vsel %vm1222_vm15, %v1525_v50, %v1219_v54 }
0x1bd4   :  { %v1228_v59 = vsel %vm1225_vm1, %v1227_v57, %v1223_v56 }
0x1bd5   :  { %v1231_v10 = vmul.f32 %v1228_v59, %v1891_v19 }
0x1c1a   :  { %v1234_v58 = vpop.permute.xlu2 %1233 }
0x1c1b   :  { %v1236_v60 = vmul.f32 %v1234_v58, %v1228_v59 }
0x1c1d   :  { %1238 = vrot.lane.b32.xlu1 %v1236_v60, %s1567_s26 }
0x1c22   :  { %v703_v61 = vpop.permute.xlu2 %702 }
0x1c23   :  { %v705_v63 = vmul.f32 %v703_v61, %v686_v33  ;;  %v1313_v33 = vld [vmem:[%s1941_s7 + $0x8] sm:$0xff] }
0x1c24   :  { %1339 = vmatpush.msrb.mxu1 %v1313_v33 }
0x1c25   :  { %707 = vrot.lane.b32.xlu1 %v705_v63, %s1568_s27 }
0x1c26   :  { %1340 = vmatpush.msrb.mxu1 %v1312_v34 }
0x1c8f   :  { %v1239_v11 = vpop.permute.xlu1 %1238 }
0x1c90   :  { %v1241_v12 = vadd.f32 %v1239_v11, %v1231_v10 }
0x1c92   :  { %1526 = vtanh.f32 %v1241_v12 }
0x1c97   :  { %v708_v13 = vpop.permute.xlu1 %707 }
0x1c98   :  { %v1527_v14 = vpop.eup %1526  ;;  %711 = vst.msk [vmem:[#allocation3 + $0x38] sm:$0xff] %vm141_vm5, %v708_v13 }
0x1c99   :  { %1244 = vrot.lane.b32.xlu0 %v1527_v14, %s1567_s26 }
0x1c9f   :  { %v719_v1 = vld [vmem:[#allocation3 + $0x38] sm:$0xff] }
0x1ca0   :  { %1382 = vmatmul.msk.f32.gmra.mxu3 %vm141_vm5, %v719_v1 }
0x1d0b   :  { %v1245_v3 = vpop.permute.xlu0 %1244 }
0x1d0c   :  { %v1247_v7 = vmul.f32 %v1245_v3, %v1228_v59 }
0x1d0e   :  { %1250 = vrot.lane.b32.xlu2 %v1247_v7, %s1568_s27 }
0x1d23   :  { %v790_v16 = vpop.f32.mrf.mxu3 }
0x1d24   :  { %v791_v9 = vadd.f32 %v1821_v15, %v790_v16 }
0x1d68   :  { %v1251_v4 = vpop.permute.xlu2 %1250 }
0x1d69   :  { %1396 = vmatmul.msk.f32.vlgmr.msrb.gmra.mxu2 %vm141_vm5, %v1251_v4 }
0x1dec   :  { %v1271_v17 = vpop.f32.mrf.mxu2 }
0x1ded   :  { %v1274_v18 = vadd.f32 %v1271_v17, %v791_v9 }
0x1def   :  { %1528 = vtanh.f32 %v1274_v18  ;;  %v1397_v2 = vmul.f32 -1.442695, %v1274_v18 }
0x1df1   :  { %1530 = vpow2.f32 %v1397_v2 }
0x1df5   :  { %v1529_v0 = vpop.eup %1528 }
0x1df6   :  { %1297 = vrot.lane.b32.xlu0 %v1529_v0, %s1567_s26 }
0x1df7   :  { %v1531_v8 = vpop.eup %1530 }
0x1df8   :  { %v1278_v5 = vadd.f32 1.0, %v1531_v8 }
0x1dfa   :  { %1532 = vrcp.f32 %v1278_v5  ;;  %v1290_v21 = vand.u32 2147483648, %v1278_v5  ;;  %vm1284_vm3 = vweird.f32 %v1278_v5  ;;  %v1288_v15 = vand.u32 2147483647, %v1278_v5 }
0x1dfc   :  { %v1291_v23 = vor.u32 1.1754944e-38, %v1290_v21  ;;  %vm1289_vm6 = vcmp.eq.f32.partialorder %v1288_v15, 8.507059e+37 }
0x1e00   :  { %v1533_v19 = vpop.eup %1532 }
0x1e01   :  { %v1280_v38 = vmul.f32 %v1533_v19, %v1278_v5  ;;  %vm1285_vm2 = vweird.f32 %v1533_v19 }
0x1e02   :  { %vm1286_vm4 = vmor %vm1284_vm3, %vm1285_vm2 }
0x1e03   :  { %v1281_v20 = vsub.f32 1.0, %v1280_v38 }
0x1e05   :  { %v1282_v62 = vmul.f32 %v1533_v19, %v1281_v20 }
0x1e07   :  { %v1283_v6 = vadd.f32 %v1533_v19, %v1282_v62 }
0x1e09   :  { %v1287_v22 = vsel %vm1286_vm4, %v1533_v19, %v1283_v6 }
0x1e0a   :  { %v1292_v25 = vsel %vm1289_vm6, %v1291_v23, %v1287_v22 }
0x1e0b   :  { %v1295_v27 = vmul.f32 %v1292_v25, %v1241_v12 }
0x1e68   :  { %v1298_v24 = vpop.permute.xlu0 %1297 }
0x1e69   :  { %v1300_v26 = vmul.f32 %v1298_v24, %v1292_v25 }
0x1e6b   :  { %1302 = vrot.lane.b32.xlu1 %v1300_v26, %s1567_s26 }
0x1edd   :  { %v1303_v28 = vpop.permute.xlu1 %1302 }
0x1ede   :  { %v1305_v29 = vadd.f32 %v1303_v28, %v1295_v27 }
0x1ee0   :  { %1534 = vtanh.f32 %v1305_v29 }
0x1ee6   :  { %v1535_v30 = vpop.eup %1534 }
0x1ee7   :  { %1308 = vrot.lane.b32.xlu2 %v1535_v30, %s1567_s26 }
0x1f41   :  { %v1309_v35 = vpop.permute.xlu2 %1308 }
0x1f42   :  { %v1311_v36 = vmul.f32 %v1309_v35, %v1292_v25 }
0x1f44   :  { %1321 = vrot.lane.b32.xlu0 %v1311_v36, %s1568_s27 }
0x1fb6   :  { %v1322_v37 = vpop.permute.xlu0 %1321 }
0x1fb7   :  { %1398 = vmatmul.msk.f32.vlgmr.msrb.gmra.mxu1 %vm141_vm5, %v1322_v37 }
0x2034   :  { %v1342_v40 = vpop.f32.mrf.mxu1 }
0x2035   :  { %v1343_v41 = vadd.f32 %v1407_v39, %v1342_v40 }
0x2037   :  { %1346 = vst.msk [vmem:[%s1943_s9] sm:$0xff] %vm1345_vm7, %v1343_v41 }
0x2038   :  { %1351 = vsyncpa [#allocation5], 1 }

</bundles_post_ra>
